<compile_context>
chip_gen: v5e
topology: v5e:2x2
jax: 0.10.0
libtpu: 0.0.40
codegen_flags: <defaults>
</compile_context>

<pallas_src>
import functools

import jax
import jax.numpy as jnp
from jax.experimental import pallas as pl
from jax.experimental.pallas import tpu as pltpu


def _const_conv_kernel(w_ref, x_ref, o_ref, xpad_ref, *, ks, H, W, Wl, outch):
    """One batch image per grid step; all outch channels fused in the body.

    w_ref   : SMEM  [outch * ks * ks]      scalar taps (flat, row-major)
    x_ref   : VMEM  [1, 1, H, W]           raw (unpadded) input image
    o_ref   : VMEM  [1, outch, H, Wl]      lane-dense output block
    xpad_ref: VMEM  [H + ks - 1, Wl+ks-1]  scratch: zero-padded input slab
    """
    pad = ks // 2

    # --- in-kernel 'same' padding (no HBM-side padded copy): zero the slab,
    # then drop the image at (row=pad, col=pad).  Everything outside the
    # H x W interior stays zero, which is exactly the conv 'same' halo.
    xpad_ref[...] = jnp.zeros(xpad_ref.shape, xpad_ref.dtype)
    xpad_ref[pad:pad + H, pad:pad + W] = x_ref[0, 0, :, :].astype(jnp.float32)

    # --- one lane-shifted, full-height slab per horizontal tap, hoisted out
    # of the dy loop (ks slab loads total instead of ks*(ks-1) shifts).
    # slabs[dx][r, j] == padded[r, j + dx]; the lane halo guarantees the
    # slice stays in-bounds and output columns >= W are exact zeros.
    slabs = [xpad_ref[:, dx:dx + Wl] for dx in range(ks)]      # each [Hp, Wl]

    # --- multiply-accumulate in f32 vregs; each (dy, dx) row window is shared
    # by all output channels.  Accumulator pressure: outch * ceil(H/8) *
    # (Wl/128) vregs (= 4 here).
    # TODO(synk): for large H, tile H with a "parallel" grid axis and a
    # (ks-1)-row halo sized from pltpu.get_tpu_info().vmem_capacity_bytes
    # (64 MiB on v7x vs 128 MiB on v5e/v6e) so accumulators stay in vregs.
    # TODO(synk): if outch grows (>= ~8), stack the ks^2 shifted slabs and do
    # a single MXU jnp.dot against the [outch, ks^2] tap matrix instead of
    # the per-tap VALU accumulate.
    accs = [jnp.zeros((H, Wl), dtype=jnp.float32) for _ in range(outch)]
    for dy in range(ks):
        for dx in range(ks):
            window = slabs[dx][dy:dy + H, :]                   # [H, Wl]
            tap = dy * ks + dx
            for oc in range(outch):
                accs[oc] = accs[oc] + window * w_ref[oc * ks * ks + tap]

    # --- lane-dense stores: full 128-lane rows, no masked vst; the wrapper
    # slices the Wl-wide result back to W.
    for oc in range(outch):
        o_ref[0, oc, :, :] = accs[oc].astype(o_ref.dtype)


def normalize_weight(const_weight, scale):
    """Reproduce Constlayer.normalize() on weight [outch, 1, ks, ks]."""
    outch, _, ks, _ = const_weight.shape
    c = ks // 2
    center = const_weight[:, 0, c, c]                                # [outch]
    sumed = (const_weight.sum(axis=(1, 2, 3)) - center) / scale      # [outch]
    # TODO(synk): PyTorch layer divides by (sum - center)/scale with no guard;
    # we match it exactly (add an epsilon only if learned weights require it).
    w = const_weight / sumed[:, None, None, None]
    w = w.at[:, 0, c, c].set(-scale)
    return w


def constlayer_forward(x, const_weight, scale=1.0):
    """x: [N, 1, H, W], const_weight: [outch, 1, ks, ks] -> [N, outch, H, W]."""
    N, Cin, H, W = x.shape
    assert Cin == 1, "Constlayer conv weight has in_channels == 1"
    outch, _, ks, _ = const_weight.shape
    pad = ks // 2

    # Tiny parameter preprocessing (glue, matches Constlayer.normalize()).
    w = normalize_weight(const_weight.astype(jnp.float32), scale)
    w_flat = w.reshape(outch * ks * ks)        # flat 1-D SMEM tap table

    Hp = H + ks - 1                            # rows incl. top/bottom halo
    Wl = pl.cdiv(W, 128) * 128                 # lane-dense compute/output width
    Ws = Wl + ks - 1                           # scratch width incl. lane halo
    assert Wl >= W and Ws >= pad + W, (Wl, Ws, W, pad)

    kernel = functools.partial(
        _const_conv_kernel, ks=ks, H=H, W=W, Wl=Wl, outch=outch)

    out_wide = pl.pallas_call(
        kernel,
        out_shape=jax.ShapeDtypeStruct((N, outch, H, Wl), jnp.float32),
        grid=(N,),
        in_specs=[
            # Flat scalar tap table, resident in SMEM.
            pl.BlockSpec(memory_space=pltpu.MemorySpace.SMEM),
            # One raw (unpadded) image per batch index; 'same' padding and the
            # f32 upconvert happen inside the kernel, so the input crosses
            # HBM exactly once and in its original dtype.
            pl.BlockSpec((1, 1, H, W), lambda n: (n, 0, 0, 0)),
        ],
        out_specs=pl.BlockSpec((1, outch, H, Wl), lambda n: (n, 0, 0, 0)),
        scratch_shapes=[pltpu.VMEM((Hp, Ws), jnp.float32)],
        # Blocks here total ~30 KB, far under every generation's default
        # scoped-VMEM limit, so no vmem_limit_bytes override is needed; when
        # H-tiling is added, derive it from the actual block sizes instead of
        # hard-coding (v7x has only 64 MiB physical VMEM).
        compiler_params=pltpu.CompilerParams(
            dimension_semantics=("parallel",),
        ),
    )(w_flat, x)

    # Drop the lane padding (kernel-side stores stay dense/unmasked).
    return out_wide[:, :, :, :W]


def _reference(x, const_weight, scale=1.0):
    """Pure-JAX reference (lax.conv) for correctness check."""
    w = normalize_weight(const_weight.astype(jnp.float32), scale)
    return jax.lax.conv_general_dilated(
        x.astype(jnp.float32), w, window_strides=(1, 1), padding="SAME",
        dimension_numbers=("NCHW", "OIHW", "NCHW"))


if __name__ == "__main__":
    key = jax.random.PRNGKey(0)
    k1, k2 = jax.random.split(key)

    N, H, W = 2, 16, 16
    outch, ks, scale = 2, 5, 1.0

    x = jax.random.normal(k1, (N, 1, H, W), dtype=jnp.float32)
    const_weight = jax.random.normal(k2, (outch, 1, ks, ks), dtype=jnp.float32)

    y = constlayer_forward(x, const_weight, scale=scale)
    y = jax.block_until_ready(y)

    y_ref = _reference(x, const_weight, scale=scale)
    assert y.shape == (N, outch, H, W)
    assert jnp.allclose(y, y_ref, atol=1e-4, rtol=1e-4), "mismatch vs reference"

    print("KERNEL_OK")
</pallas_src>

<mosaic_0001>
module attributes {stable_mosaic.version = 11 : i64} {
  func.func @_const_conv_kernel(%arg0: i32, %arg1: memref<50xf32, #tpu.memory_space<smem>>, %arg2: memref<1x1x16x16xf32, #tpu.memory_space<vmem>>, %arg3: memref<1x2x16x128xf32, #tpu.memory_space<vmem>>, %arg4: memref<20x132xf32, #tpu.memory_space<vmem>>) attributes {dimension_semantics = [#tpu.dimension_semantics<parallel>], iteration_bounds = array<i64: 2>, scalar_prefetch = 0 : i64, scratch_operands = 1 : i64, tpu.core_type = #tpu.core_type<tc>, window_params = [{transform_indices = @transform_0, window_bounds = array<i64: 50>}, {transform_indices = @transform_1, window_bounds = array<i64: 1, 1, 16, 16>}, {transform_indices = @transform_2, window_bounds = array<i64: 1, 2, 16, 128>}]} {
    %cst = arith.constant 0.000000e+00 : f32
    %0 = vector.broadcast %cst : f32 to vector<20x132xf32>
    %c0 = arith.constant 0 : index
    %c0_0 = arith.constant 0 : index
    %1 = vector.load %arg4[%c0, %c0_0] : memref<20x132xf32, #tpu.memory_space<vmem>>, vector<20x132xf32>
    tpu.vector_store %arg4[%c0, %c0_0], %0 {strides = array<i32>} : memref<20x132xf32, #tpu.memory_space<vmem>>, vector<20x132xf32>,
    %c0_1 = arith.constant 0 : index
    %c0_2 = arith.constant 0 : index
    %c0_3 = arith.constant 0 : index
    %c0_4 = arith.constant 0 : index
    %2 = vector.load %arg2[%c0_1, %c0_2, %c0_3, %c0_4] : memref<1x1x16x16xf32, #tpu.memory_space<vmem>>, vector<1x1x16x16xf32>
    %3 = vector.shape_cast %2 : vector<1x1x16x16xf32> to vector<16x16xf32>
    %c2 = arith.constant 2 : index
    %c2_5 = arith.constant 2 : index
    %4 = vector.load %arg4[%c2, %c2_5] : memref<20x132xf32, #tpu.memory_space<vmem>>, vector<16x16xf32>
    tpu.vector_store %arg4[%c2, %c2_5], %3 {strides = array<i32>} : memref<20x132xf32, #tpu.memory_space<vmem>>, vector<16x16xf32>,
    %c0_6 = arith.constant 0 : index
    %c0_7 = arith.constant 0 : index
    %5 = vector.load %arg4[%c0_6, %c0_7] : memref<20x132xf32, #tpu.memory_space<vmem>>, vector<20x128xf32>
    %c0_8 = arith.constant 0 : index
    %c1 = arith.constant 1 : index
    %6 = vector.load %arg4[%c0_8, %c1] : memref<20x132xf32, #tpu.memory_space<vmem>>, vector<20x128xf32>
    %c0_9 = arith.constant 0 : index
    %c2_10 = arith.constant 2 : index
    %7 = vector.load %arg4[%c0_9, %c2_10] : memref<20x132xf32, #tpu.memory_space<vmem>>, vector<20x128xf32>
    %c0_11 = arith.constant 0 : index
    %c3 = arith.constant 3 : index
    %8 = vector.load %arg4[%c0_11, %c3] : memref<20x132xf32, #tpu.memory_space<vmem>>, vector<20x128xf32>
    %c0_12 = arith.constant 0 : index
    %c4 = arith.constant 4 : index
    %9 = vector.load %arg4[%c0_12, %c4] : memref<20x132xf32, #tpu.memory_space<vmem>>, vector<20x128xf32>
    %cst_13 = arith.constant 0.000000e+00 : f32
    %10 = vector.broadcast %cst_13 : f32 to vector<16x128xf32>
    %cst_14 = arith.constant 0.000000e+00 : f32
    %11 = vector.broadcast %cst_14 : f32 to vector<16x128xf32>
    %12 = vector.extract_strided_slice %5 {offsets = [0, 0], sizes = [16, 128], strides = [1, 1]} : vector<20x128xf32> to vector<16x128xf32>
    %c0_15 = arith.constant 0 : index
    %13 = memref.load %arg1[%c0_15] : memref<50xf32, #tpu.memory_space<smem>>
    %14 = vector.broadcast %13 : f32 to vector<16x128xf32>
    %15 = arith.mulf %12, %14 : vector<16x128xf32>
    %16 = arith.addf %10, %15 : vector<16x128xf32>
    %c25 = arith.constant 25 : index
    %17 = memref.load %arg1[%c25] : memref<50xf32, #tpu.memory_space<smem>>
    %18 = vector.broadcast %17 : f32 to vector<16x128xf32>
    %19 = arith.mulf %12, %18 : vector<16x128xf32>
    %20 = arith.addf %11, %19 : vector<16x128xf32>
    %21 = vector.extract_strided_slice %6 {offsets = [0, 0], sizes = [16, 128], strides = [1, 1]} : vector<20x128xf32> to vector<16x128xf32>
    %c1_16 = arith.constant 1 : index
    %22 = memref.load %arg1[%c1_16] : memref<50xf32, #tpu.memory_space<smem>>
    %23 = vector.broadcast %22 : f32 to vector<16x128xf32>
    %24 = arith.mulf %21, %23 : vector<16x128xf32>
    %25 = arith.addf %16, %24 : vector<16x128xf32>
    %c26 = arith.constant 26 : index
    %26 = memref.load %arg1[%c26] : memref<50xf32, #tpu.memory_space<smem>>
    %27 = vector.broadcast %26 : f32 to vector<16x128xf32>
    %28 = arith.mulf %21, %27 : vector<16x128xf32>
    %29 = arith.addf %20, %28 : vector<16x128xf32>
    %30 = vector.extract_strided_slice %7 {offsets = [0, 0], sizes = [16, 128], strides = [1, 1]} : vector<20x128xf32> to vector<16x128xf32>
    %c2_17 = arith.constant 2 : index
    %31 = memref.load %arg1[%c2_17] : memref<50xf32, #tpu.memory_space<smem>>
    %32 = vector.broadcast %31 : f32 to vector<16x128xf32>
    %33 = arith.mulf %30, %32 : vector<16x128xf32>
    %34 = arith.addf %25, %33 : vector<16x128xf32>
    %c27 = arith.constant 27 : index
    %35 = memref.load %arg1[%c27] : memref<50xf32, #tpu.memory_space<smem>>
    %36 = vector.broadcast %35 : f32 to vector<16x128xf32>
    %37 = arith.mulf %30, %36 : vector<16x128xf32>
    %38 = arith.addf %29, %37 : vector<16x128xf32>
    %39 = vector.extract_strided_slice %8 {offsets = [0, 0], sizes = [16, 128], strides = [1, 1]} : vector<20x128xf32> to vector<16x128xf32>
    %c3_18 = arith.constant 3 : index
    %40 = memref.load %arg1[%c3_18] : memref<50xf32, #tpu.memory_space<smem>>
    %41 = vector.broadcast %40 : f32 to vector<16x128xf32>
    %42 = arith.mulf %39, %41 : vector<16x128xf32>
    %43 = arith.addf %34, %42 : vector<16x128xf32>
    %c28 = arith.constant 28 : index
    %44 = memref.load %arg1[%c28] : memref<50xf32, #tpu.memory_space<smem>>
    %45 = vector.broadcast %44 : f32 to vector<16x128xf32>
    %46 = arith.mulf %39, %45 : vector<16x128xf32>
    %47 = arith.addf %38, %46 : vector<16x128xf32>
    %48 = vector.extract_strided_slice %9 {offsets = [0, 0], sizes = [16, 128], strides = [1, 1]} : vector<20x128xf32> to vector<16x128xf32>
    %c4_19 = arith.constant 4 : index
    %49 = memref.load %arg1[%c4_19] : memref<50xf32, #tpu.memory_space<smem>>
    %50 = vector.broadcast %49 : f32 to vector<16x128xf32>
    %51 = arith.mulf %48, %50 : vector<16x128xf32>
    %52 = arith.addf %43, %51 : vector<16x128xf32>
    %c29 = arith.constant 29 : index
    %53 = memref.load %arg1[%c29] : memref<50xf32, #tpu.memory_space<smem>>
    %54 = vector.broadcast %53 : f32 to vector<16x128xf32>
    %55 = arith.mulf %48, %54 : vector<16x128xf32>
    %56 = arith.addf %47, %55 : vector<16x128xf32>
    %57 = vector.extract_strided_slice %5 {offsets = [1, 0], sizes = [16, 128], strides = [1, 1]} : vector<20x128xf32> to vector<16x128xf32>
    %c5 = arith.constant 5 : index
    %58 = memref.load %arg1[%c5] : memref<50xf32, #tpu.memory_space<smem>>
    %59 = vector.broadcast %58 : f32 to vector<16x128xf32>
    %60 = arith.mulf %57, %59 : vector<16x128xf32>
    %61 = arith.addf %52, %60 : vector<16x128xf32>
    %c30 = arith.constant 30 : index
    %62 = memref.load %arg1[%c30] : memref<50xf32, #tpu.memory_space<smem>>
    %63 = vector.broadcast %62 : f32 to vector<16x128xf32>
    %64 = arith.mulf %57, %63 : vector<16x128xf32>
    %65 = arith.addf %56, %64 : vector<16x128xf32>
    %66 = vector.extract_strided_slice %6 {offsets = [1, 0], sizes = [16, 128], strides = [1, 1]} : vector<20x128xf32> to vector<16x128xf32>
    %c6 = arith.constant 6 : index
    %67 = memref.load %arg1[%c6] : memref<50xf32, #tpu.memory_space<smem>>
    %68 = vector.broadcast %67 : f32 to vector<16x128xf32>
    %69 = arith.mulf %66, %68 : vector<16x128xf32>
    %70 = arith.addf %61, %69 : vector<16x128xf32>
    %c31 = arith.constant 31 : index
    %71 = memref.load %arg1[%c31] : memref<50xf32, #tpu.memory_space<smem>>
    %72 = vector.broadcast %71 : f32 to vector<16x128xf32>
    %73 = arith.mulf %66, %72 : vector<16x128xf32>
    %74 = arith.addf %65, %73 : vector<16x128xf32>
    %75 = vector.extract_strided_slice %7 {offsets = [1, 0], sizes = [16, 128], strides = [1, 1]} : vector<20x128xf32> to vector<16x128xf32>
    %c7 = arith.constant 7 : index
    %76 = memref.load %arg1[%c7] : memref<50xf32, #tpu.memory_space<smem>>
    %77 = vector.broadcast %76 : f32 to vector<16x128xf32>
    %78 = arith.mulf %75, %77 : vector<16x128xf32>
    %79 = arith.addf %70, %78 : vector<16x128xf32>
    %c32 = arith.constant 32 : index
    %80 = memref.load %arg1[%c32] : memref<50xf32, #tpu.memory_space<smem>>
    %81 = vector.broadcast %80 : f32 to vector<16x128xf32>
    %82 = arith.mulf %75, %81 : vector<16x128xf32>
    %83 = arith.addf %74, %82 : vector<16x128xf32>
    %84 = vector.extract_strided_slice %8 {offsets = [1, 0], sizes = [16, 128], strides = [1, 1]} : vector<20x128xf32> to vector<16x128xf32>
    %c8 = arith.constant 8 : index
    %85 = memref.load %arg1[%c8] : memref<50xf32, #tpu.memory_space<smem>>
    %86 = vector.broadcast %85 : f32 to vector<16x128xf32>
    %87 = arith.mulf %84, %86 : vector<16x128xf32>
    %88 = arith.addf %79, %87 : vector<16x128xf32>
    %c33 = arith.constant 33 : index
    %89 = memref.load %arg1[%c33] : memref<50xf32, #tpu.memory_space<smem>>
    %90 = vector.broadcast %89 : f32 to vector<16x128xf32>
    %91 = arith.mulf %84, %90 : vector<16x128xf32>
    %92 = arith.addf %83, %91 : vector<16x128xf32>
    %93 = vector.extract_strided_slice %9 {offsets = [1, 0], sizes = [16, 128], strides = [1, 1]} : vector<20x128xf32> to vector<16x128xf32>
    %c9 = arith.constant 9 : index
    %94 = memref.load %arg1[%c9] : memref<50xf32, #tpu.memory_space<smem>>
    %95 = vector.broadcast %94 : f32 to vector<16x128xf32>
    %96 = arith.mulf %93, %95 : vector<16x128xf32>
    %97 = arith.addf %88, %96 : vector<16x128xf32>
    %c34 = arith.constant 34 : index
    %98 = memref.load %arg1[%c34] : memref<50xf32, #tpu.memory_space<smem>>
    %99 = vector.broadcast %98 : f32 to vector<16x128xf32>
    %100 = arith.mulf %93, %99 : vector<16x128xf32>
    %101 = arith.addf %92, %100 : vector<16x128xf32>
    %102 = vector.extract_strided_slice %5 {offsets = [2, 0], sizes = [16, 128], strides = [1, 1]} : vector<20x128xf32> to vector<16x128xf32>
    %c10 = arith.constant 10 : index
    %103 = memref.load %arg1[%c10] : memref<50xf32, #tpu.memory_space<smem>>
    %104 = vector.broadcast %103 : f32 to vector<16x128xf32>
    %105 = arith.mulf %102, %104 : vector<16x128xf32>
    %106 = arith.addf %97, %105 : vector<16x128xf32>
    %c35 = arith.constant 35 : index
    %107 = memref.load %arg1[%c35] : memref<50xf32, #tpu.memory_space<smem>>
    %108 = vector.broadcast %107 : f32 to vector<16x128xf32>
    %109 = arith.mulf %102, %108 : vector<16x128xf32>
    %110 = arith.addf %101, %109 : vector<16x128xf32>
    %111 = vector.extract_strided_slice %6 {offsets = [2, 0], sizes = [16, 128], strides = [1, 1]} : vector<20x128xf32> to vector<16x128xf32>
    %c11 = arith.constant 11 : index
    %112 = memref.load %arg1[%c11] : memref<50xf32, #tpu.memory_space<smem>>
    %113 = vector.broadcast %112 : f32 to vector<16x128xf32>
    %114 = arith.mulf %111, %113 : vector<16x128xf32>
    %115 = arith.addf %106, %114 : vector<16x128xf32>
    %c36 = arith.constant 36 : index
    %116 = memref.load %arg1[%c36] : memref<50xf32, #tpu.memory_space<smem>>
    %117 = vector.broadcast %116 : f32 to vector<16x128xf32>
    %118 = arith.mulf %111, %117 : vector<16x128xf32>
    %119 = arith.addf %110, %118 : vector<16x128xf32>
    %120 = vector.extract_strided_slice %7 {offsets = [2, 0], sizes = [16, 128], strides = [1, 1]} : vector<20x128xf32> to vector<16x128xf32>
    %c12 = arith.constant 12 : index
    %121 = memref.load %arg1[%c12] : memref<50xf32, #tpu.memory_space<smem>>
    %122 = vector.broadcast %121 : f32 to vector<16x128xf32>
    %123 = arith.mulf %120, %122 : vector<16x128xf32>
    %124 = arith.addf %115, %123 : vector<16x128xf32>
    %c37 = arith.constant 37 : index
    %125 = memref.load %arg1[%c37] : memref<50xf32, #tpu.memory_space<smem>>
    %126 = vector.broadcast %125 : f32 to vector<16x128xf32>
    %127 = arith.mulf %120, %126 : vector<16x128xf32>
    %128 = arith.addf %119, %127 : vector<16x128xf32>
    %129 = vector.extract_strided_slice %8 {offsets = [2, 0], sizes = [16, 128], strides = [1, 1]} : vector<20x128xf32> to vector<16x128xf32>
    %c13 = arith.constant 13 : index
    %130 = memref.load %arg1[%c13] : memref<50xf32, #tpu.memory_space<smem>>
    %131 = vector.broadcast %130 : f32 to vector<16x128xf32>
    %132 = arith.mulf %129, %131 : vector<16x128xf32>
    %133 = arith.addf %124, %132 : vector<16x128xf32>
    %c38 = arith.constant 38 : index
    %134 = memref.load %arg1[%c38] : memref<50xf32, #tpu.memory_space<smem>>
    %135 = vector.broadcast %134 : f32 to vector<16x128xf32>
    %136 = arith.mulf %129, %135 : vector<16x128xf32>
    %137 = arith.addf %128, %136 : vector<16x128xf32>
    %138 = vector.extract_strided_slice %9 {offsets = [2, 0], sizes = [16, 128], strides = [1, 1]} : vector<20x128xf32> to vector<16x128xf32>
    %c14 = arith.constant 14 : index
    %139 = memref.load %arg1[%c14] : memref<50xf32, #tpu.memory_space<smem>>
    %140 = vector.broadcast %139 : f32 to vector<16x128xf32>
    %141 = arith.mulf %138, %140 : vector<16x128xf32>
    %142 = arith.addf %133, %141 : vector<16x128xf32>
    %c39 = arith.constant 39 : index
    %143 = memref.load %arg1[%c39] : memref<50xf32, #tpu.memory_space<smem>>
    %144 = vector.broadcast %143 : f32 to vector<16x128xf32>
    %145 = arith.mulf %138, %144 : vector<16x128xf32>
    %146 = arith.addf %137, %145 : vector<16x128xf32>
    %147 = vector.extract_strided_slice %5 {offsets = [3, 0], sizes = [16, 128], strides = [1, 1]} : vector<20x128xf32> to vector<16x128xf32>
    %c15 = arith.constant 15 : index
    %148 = memref.load %arg1[%c15] : memref<50xf32, #tpu.memory_space<smem>>
    %149 = vector.broadcast %148 : f32 to vector<16x128xf32>
    %150 = arith.mulf %147, %149 : vector<16x128xf32>
    %151 = arith.addf %142, %150 : vector<16x128xf32>
    %c40 = arith.constant 40 : index
    %152 = memref.load %arg1[%c40] : memref<50xf32, #tpu.memory_space<smem>>
    %153 = vector.broadcast %152 : f32 to vector<16x128xf32>
    %154 = arith.mulf %147, %153 : vector<16x128xf32>
    %155 = arith.addf %146, %154 : vector<16x128xf32>
    %156 = vector.extract_strided_slice %6 {offsets = [3, 0], sizes = [16, 128], strides = [1, 1]} : vector<20x128xf32> to vector<16x128xf32>
    %c16 = arith.constant 16 : index
    %157 = memref.load %arg1[%c16] : memref<50xf32, #tpu.memory_space<smem>>
    %158 = vector.broadcast %157 : f32 to vector<16x128xf32>
    %159 = arith.mulf %156, %158 : vector<16x128xf32>
    %160 = arith.addf %151, %159 : vector<16x128xf32>
    %c41 = arith.constant 41 : index
    %161 = memref.load %arg1[%c41] : memref<50xf32, #tpu.memory_space<smem>>
    %162 = vector.broadcast %161 : f32 to vector<16x128xf32>
    %163 = arith.mulf %156, %162 : vector<16x128xf32>
    %164 = arith.addf %155, %163 : vector<16x128xf32>
    %165 = vector.extract_strided_slice %7 {offsets = [3, 0], sizes = [16, 128], strides = [1, 1]} : vector<20x128xf32> to vector<16x128xf32>
    %c17 = arith.constant 17 : index
    %166 = memref.load %arg1[%c17] : memref<50xf32, #tpu.memory_space<smem>>
    %167 = vector.broadcast %166 : f32 to vector<16x128xf32>
    %168 = arith.mulf %165, %167 : vector<16x128xf32>
    %169 = arith.addf %160, %168 : vector<16x128xf32>
    %c42 = arith.constant 42 : index
    %170 = memref.load %arg1[%c42] : memref<50xf32, #tpu.memory_space<smem>>
    %171 = vector.broadcast %170 : f32 to vector<16x128xf32>
    %172 = arith.mulf %165, %171 : vector<16x128xf32>
    %173 = arith.addf %164, %172 : vector<16x128xf32>
    %174 = vector.extract_strided_slice %8 {offsets = [3, 0], sizes = [16, 128], strides = [1, 1]} : vector<20x128xf32> to vector<16x128xf32>
    %c18 = arith.constant 18 : index
    %175 = memref.load %arg1[%c18] : memref<50xf32, #tpu.memory_space<smem>>
    %176 = vector.broadcast %175 : f32 to vector<16x128xf32>
    %177 = arith.mulf %174, %176 : vector<16x128xf32>
    %178 = arith.addf %169, %177 : vector<16x128xf32>
    %c43 = arith.constant 43 : index
    %179 = memref.load %arg1[%c43] : memref<50xf32, #tpu.memory_space<smem>>
    %180 = vector.broadcast %179 : f32 to vector<16x128xf32>
    %181 = arith.mulf %174, %180 : vector<16x128xf32>
    %182 = arith.addf %173, %181 : vector<16x128xf32>
    %183 = vector.extract_strided_slice %9 {offsets = [3, 0], sizes = [16, 128], strides = [1, 1]} : vector<20x128xf32> to vector<16x128xf32>
    %c19 = arith.constant 19 : index
    %184 = memref.load %arg1[%c19] : memref<50xf32, #tpu.memory_space<smem>>
    %185 = vector.broadcast %184 : f32 to vector<16x128xf32>
    %186 = arith.mulf %183, %185 : vector<16x128xf32>
    %187 = arith.addf %178, %186 : vector<16x128xf32>
    %c44 = arith.constant 44 : index
    %188 = memref.load %arg1[%c44] : memref<50xf32, #tpu.memory_space<smem>>
    %189 = vector.broadcast %188 : f32 to vector<16x128xf32>
    %190 = arith.mulf %183, %189 : vector<16x128xf32>
    %191 = arith.addf %182, %190 : vector<16x128xf32>
    %192 = vector.extract_strided_slice %5 {offsets = [4, 0], sizes = [16, 128], strides = [1, 1]} : vector<20x128xf32> to vector<16x128xf32>
    %c20 = arith.constant 20 : index
    %193 = memref.load %arg1[%c20] : memref<50xf32, #tpu.memory_space<smem>>
    %194 = vector.broadcast %193 : f32 to vector<16x128xf32>
    %195 = arith.mulf %192, %194 : vector<16x128xf32>
    %196 = arith.addf %187, %195 : vector<16x128xf32>
    %c45 = arith.constant 45 : index
    %197 = memref.load %arg1[%c45] : memref<50xf32, #tpu.memory_space<smem>>
    %198 = vector.broadcast %197 : f32 to vector<16x128xf32>
    %199 = arith.mulf %192, %198 : vector<16x128xf32>
    %200 = arith.addf %191, %199 : vector<16x128xf32>
    %201 = vector.extract_strided_slice %6 {offsets = [4, 0], sizes = [16, 128], strides = [1, 1]} : vector<20x128xf32> to vector<16x128xf32>
    %c21 = arith.constant 21 : index
    %202 = memref.load %arg1[%c21] : memref<50xf32, #tpu.memory_space<smem>>
    %203 = vector.broadcast %202 : f32 to vector<16x128xf32>
    %204 = arith.mulf %201, %203 : vector<16x128xf32>
    %205 = arith.addf %196, %204 : vector<16x128xf32>
    %c46 = arith.constant 46 : index
    %206 = memref.load %arg1[%c46] : memref<50xf32, #tpu.memory_space<smem>>
    %207 = vector.broadcast %206 : f32 to vector<16x128xf32>
    %208 = arith.mulf %201, %207 : vector<16x128xf32>
    %209 = arith.addf %200, %208 : vector<16x128xf32>
    %210 = vector.extract_strided_slice %7 {offsets = [4, 0], sizes = [16, 128], strides = [1, 1]} : vector<20x128xf32> to vector<16x128xf32>
    %c22 = arith.constant 22 : index
    %211 = memref.load %arg1[%c22] : memref<50xf32, #tpu.memory_space<smem>>
    %212 = vector.broadcast %211 : f32 to vector<16x128xf32>
    %213 = arith.mulf %210, %212 : vector<16x128xf32>
    %214 = arith.addf %205, %213 : vector<16x128xf32>
    %c47 = arith.constant 47 : index
    %215 = memref.load %arg1[%c47] : memref<50xf32, #tpu.memory_space<smem>>
    %216 = vector.broadcast %215 : f32 to vector<16x128xf32>
    %217 = arith.mulf %210, %216 : vector<16x128xf32>
    %218 = arith.addf %209, %217 : vector<16x128xf32>
    %219 = vector.extract_strided_slice %8 {offsets = [4, 0], sizes = [16, 128], strides = [1, 1]} : vector<20x128xf32> to vector<16x128xf32>
    %c23 = arith.constant 23 : index
    %220 = memref.load %arg1[%c23] : memref<50xf32, #tpu.memory_space<smem>>
    %221 = vector.broadcast %220 : f32 to vector<16x128xf32>
    %222 = arith.mulf %219, %221 : vector<16x128xf32>
    %223 = arith.addf %214, %222 : vector<16x128xf32>
    %c48 = arith.constant 48 : index
    %224 = memref.load %arg1[%c48] : memref<50xf32, #tpu.memory_space<smem>>
    %225 = vector.broadcast %224 : f32 to vector<16x128xf32>
    %226 = arith.mulf %219, %225 : vector<16x128xf32>
    %227 = arith.addf %218, %226 : vector<16x128xf32>
    %228 = vector.extract_strided_slice %9 {offsets = [4, 0], sizes = [16, 128], strides = [1, 1]} : vector<20x128xf32> to vector<16x128xf32>
    %c24 = arith.constant 24 : index
    %229 = memref.load %arg1[%c24] : memref<50xf32, #tpu.memory_space<smem>>
    %230 = vector.broadcast %229 : f32 to vector<16x128xf32>
    %231 = arith.mulf %228, %230 : vector<16x128xf32>
    %232 = arith.addf %223, %231 : vector<16x128xf32>
    %c49 = arith.constant 49 : index
    %233 = memref.load %arg1[%c49] : memref<50xf32, #tpu.memory_space<smem>>
    %234 = vector.broadcast %233 : f32 to vector<16x128xf32>
    %235 = arith.mulf %228, %234 : vector<16x128xf32>
    %236 = arith.addf %227, %235 : vector<16x128xf32>
    %c0_20 = arith.constant 0 : index
    %c0_21 = arith.constant 0 : index
    %c0_22 = arith.constant 0 : index
    %c0_23 = arith.constant 0 : index
    %237 = vector.load %arg3[%c0_20, %c0_21, %c0_22, %c0_23] : memref<1x2x16x128xf32, #tpu.memory_space<vmem>>, vector<1x1x16x128xf32>
    %238 = vector.shape_cast %237 : vector<1x1x16x128xf32> to vector<16x128xf32>
    %239 = vector.shape_cast %232 : vector<16x128xf32> to vector<1x1x16x128xf32>
    tpu.vector_store %arg3[%c0_20, %c0_21, %c0_22, %c0_23], %239 {strides = array<i32>} : memref<1x2x16x128xf32, #tpu.memory_space<vmem>>, vector<1x1x16x128xf32>,
    %c0_24 = arith.constant 0 : index
    %c1_25 = arith.constant 1 : index
    %c0_26 = arith.constant 0 : index
    %c0_27 = arith.constant 0 : index
    %240 = vector.load %arg3[%c0_24, %c1_25, %c0_26, %c0_27] : memref<1x2x16x128xf32, #tpu.memory_space<vmem>>, vector<1x1x16x128xf32>
    %241 = vector.shape_cast %240 : vector<1x1x16x128xf32> to vector<16x128xf32>
    %242 = vector.shape_cast %236 : vector<16x128xf32> to vector<1x1x16x128xf32>
    tpu.vector_store %arg3[%c0_24, %c1_25, %c0_26, %c0_27], %242 {strides = array<i32>} : memref<1x2x16x128xf32, #tpu.memory_space<vmem>>, vector<1x1x16x128xf32>,
    return
  }
  func.func @transform_0(%arg0: i32) -> i32 {
    %c0_i32 = arith.constant 0 : i32
    %c0_i32_0 = arith.constant 0 : i32
    return %c0_i32 : i32
  }
  func.func @transform_1(%arg0: i32) -> (i32, i32, i32, i32) {
    %c0_i32 = arith.constant 0 : i32
    %c0_i32_0 = arith.constant 0 : i32
    %c0_i32_1 = arith.constant 0 : i32
    %c0_i32_2 = arith.constant 0 : i32
    return %arg0, %c0_i32, %c0_i32_0, %c0_i32_1 : i32, i32, i32, i32
  }
  func.func @transform_2(%arg0: i32) -> (i32, i32, i32, i32) {
    %c0_i32 = arith.constant 0 : i32
    %c0_i32_0 = arith.constant 0 : i32
    %c0_i32_1 = arith.constant 0 : i32
    %c0_i32_2 = arith.constant 0 : i32
    return %arg0, %c0_i32, %c0_i32_0, %c0_i32_1 : i32, i32, i32, i32
  }
}

</mosaic_0001>

<bundles_post_ra>
// kernel: tpu_custom_call.1
= control target key start
LH: loop header
LB: loop body
LE: loop exit
PB: predicated region body
PF: predicated region fallthrough
CT: control target
= control target key end

     0   :  { %7 = vsyncpa [#allocation6], 0  ;;  %s3514_s0 = inlined_call_operand.hbm [shape: f32[50], index: 0, kind: input, shape index: {}]   ;;  %s3515_s1 = inlined_call_operand.hbm [shape: f32[2,1,16,16], index: 1, kind: input, shape index: {}]   ;;  %s3516_s2 = inlined_call_operand.hbm [shape: f32[2,2,16,128], index: 2, kind: output, shape index: {}]  }
   0x1   :  { %8 = vsyncpa [#allocation4], 0 }
   0x2   :  { %10 = vsyncpa [#allocation4 + $0x1], 0 }
   0x3   :  { %11 = vsyncpa [#allocation5], 0 }
   0x4   :  { %13 = vsyncpa [#allocation5 + $0x1], 0  ;;  %s2176_s9 = smov 0   ;;  %s2178_s10 = smov 0  }
   0x5   :  { %s2180_s11 = smov 0   ;;  %s2182_s12 = smov 0  }
   0x6 LB: > { %s2197_s13 = sadd.s32 4294967295, %s2148_s12   ;;  %s1885_s14 = sadd.s32 4294967294, %s2148_s12   ;;  %s2148_s12 = sphi %s2182_s12, %s3527_s12   ;;  %s2144_s11 = sphi %s2180_s11, %s3526_s11   ;;  %s2140_s10 = sphi %s2178_s10, %s3525_s10   ;;  %s2136_s9 = sphi %s2176_s9, %s3524_s9  }
   0x7   : > { %s2201_s15 = sadd.s32 1, %s2148_s12   ;;  %s47_s16 = sadd.s32 1, %s2144_s11 }
   0x8   : > { %s44_s17 = ssub.s32 %s2148_s12, %s2201_s15  ;;  %p54_p0 = scmp.ne.s32.totalorder %s2144_s11, %s2140_s10 }
   0x9   : > { %p45_p1 = scmp.eq.s32.totalorder %s44_s17, 0  ;;  %p55_p2 = scmp.eq.s32.totalorder %s2148_s12, 0 }
   0xa   : > { %p60_p3 = scmp.ne.s32.totalorder %s2140_s10, %s2136_s9  ;;  %p61_p4 = scmp.eq.s32.totalorder %s2197_s13, 0 }
   0xb   : > { %s2213_s18 = scalar_select %p45_p1, %s2144_s11, %s47_s16  }
   0xc   : > { %p2215_p5 = por %p55_p2, %p54_p0  ;;  %p2221_p6 = por %p61_p4, %p60_p3 }
   0xd   : > { %p84_p7 = scmp.eq.s32.totalorder %s2197_s13, 1  ;;  %p90_p8 = scmp.eq.s32.totalorder %s1885_s14, 1 }
   0xe   : > { %p1886_p9 = scmp.ge.s32.totalorder %s2148_s12, 1  ;;  %p97_p10 = scmp.lt.s32.totalorder %s2148_s12, 3 }
   0xf   : > { %p2228_p11 = por %p84_p7, %p54_p0  ;;  %p2232_p12 = por %p90_p8, %p60_p3 }
  0x10   : > { %p2236_p13 = pnand %p1886_p9, %p97_p10  ;;  %s109_s26 = sshll.u32 %s3514_s0, 4  ;;  %s110_s26 = int_to_ptr.hbm [resolvable:$true] %s109_s26 }
  0x11   : > { %p1975_p2 = scmp.lt.s32.totalorder %s2148_s12, 2  ;;  %s120_s27 = sand.u32 1, %s2144_s11  }
  0x12   : > { %p1962_p1 = pneg %p2236_p13  ;;  %s1889_s29 = sshll.u32 %s120_s27, 4 }
  0x13   : > { %p2252_p3 = pnand %p1975_p2, %p2215_p5  ;;  %s2150_s30 = smov [#allocation3]  }
  0x14   : > { %p1963_p7 = pnand %p1962_p1, %p61_p4  ;;  %s1952_s3 = sshll.u32 %s2148_s12, 4 }
  0x15   : > { %s124_s4 = scalar_lea.vmem [#allocation7], %s1889_s29  ;;  %s129_s8 = scalar_lea.hbm %s3515_s1, %s1952_s3 }
  0x16   : > { %1965 = dma.hbm_to_smem (!%p1963_p7), %s110_s26, 16, %s2150_s30, [#allocation6]  }
  0x17   : > { %s132_s5 = sshll.u32 %s124_s4, 4  ;;  %s130_s14 = sshll.u32 %s129_s8, 4  ;;  %s133_s5 = int_to_ptr.vmem [resolvable:$true] %s132_s5  ;;  %s131_s14 = int_to_ptr.hbm [resolvable:$true] %s130_s14 }
  0x18   : > { %s121_s16 = scalar_lea.sflag [#allocation4], %s120_s27  ;;  %s2048_s17 = sshra.s32 %s131_s14, 4  ;;  %s2049_s17 = int_to_ptr.hbm [resolvable:$true] %s2048_s17 }
  0x19   : > { %s2050_s19 = scalar_lea.hbm %s2049_s17, 16  ;;  %p2052_p8 = pneg %p2252_p3 }
  0x1a   : > { %p2051_p5 = scmp.ne.s32.totalorder %s2049_s17, %s2050_s19  ;;  %s2055_s26 = scalar_lea.hbm %s3515_s1, 32 }
  0x1b   : > { %p2056_p1 = scmp.lt.s32.totalorder %s2049_s17, %s3515_s1  ;;  %p2057_p2 = scmp.lt.s32.totalorder %s2055_s26, %s2050_s19 }
  0x1c   : > { %p2053_p9 = pnand %p2052_p8, %p2051_p5 }
  0x1d   : > { %p2058_p7 = por %p2057_p2, %p2056_p1 }
  0x1e   : > { %p2054_p10 = pneg %p2053_p9 }
  0x20   : > { %p2059_p0 = pnand %p2058_p7, %p2054_p10 }
  0x22   : > { %2062 = shalt.err (!%p2059_p0)
}
  0x23   : > { %s2151_s27 = smov 128   ;;  %s2152_s3 = smov 8  }
  0x24   : > { %1969 = dma.hbm_to_vmem [thread:$0]  (!%p2252_p3), %s131_s14, 256, %s133_s5, %s121_s16, %s2151_s27, %s2151_s27, %s2152_s3  }
  0x25   : > { %144 = sbr.rel (%p2236_p13) target bundleno = 660 (0x294), region = 28 }
  0x2a   : > { %2123 = dma.done.wait (%p61_p4), [#allocation6], 16  }
  0x2b   : > { %2125 = vsyncadd (%p61_p4), [#allocation6], 4294967280  ;;  %s2277_s4 = sand.u32 1, %s2140_s10  }
  0x2c   : > { %s1894_s6 = sshll.u32 %s2277_s4, 4  ;;  %s152_s7 = scalar_lea.sflag [#allocation4], %s2277_s4 }
  0x2d   : > { %s155_s8 = scalar_lea.vmem [#allocation7], %s1894_s6 }
  0x2e   : > { %2127 = dma.done.wait (%p2221_p6), %s152_s7, 256  }
  0x2f   : > { %2129 = vsyncadd (%p2221_p6), %s152_s7, 4294967040 }
  0x30   : > { %161 = sfence }
  0x31   : > { %v186_v0 = vld [vmem:[%s155_s8] sm:$0xff]  ;;  %v187_v1 = vld [vmem:[%s155_s8 + $0x8] sm:$0xff]  ;;  %vm179_vm0 = vcmask 31744   ;;  %v2153_v4 = vmov 0.0   ;;  %s1897_s23 = sld [smem:[#allocation3 + $0x1]]  ;;  %s2154_s5 = smov 2  }
  0x32   : > { %v191_v2 = vrot.slane %v186_v0, 6  ;;  %v192_v3 = vrot.slane %v187_v1, 6  ;;  %180 = vst.msk [vmem:[#allocation2 + $0x8] sm:$0xff] %vm179_vm0, %v2153_v4  ;;  %s1898_s28 = sld [smem:[#allocation3 + $0x1a]]  ;;  %vm190_vm1 = vcmask 1041408   ;;  %s2155_s14 = smov 127  }
  0x33   : > { %182 = vst.msk [vmem:[#allocation2 + $0x18] sm:$0xff] %vm179_vm0, %v2153_v4  ;;  %s1900_s20 = sld [smem:[#allocation3 + $0x1b]]  ;;  %s2156_s19 = smov 126   ;;  %vm184_vm2 = vcmask 27648   ;;  %vm431_vm3 = vcmask 1046528   ;;  %vm203_vm4 = vcmask 146450  }
  0x34   : > { %194 = vrot.lane.b32.xlu0 %v191_v2, %s2154_s5  ;;  %198 = vrot.lane.b32.xlu1 %v192_v3, %s2154_s5  ;;  %178 = vst [vmem:[#allocation2] sm:$0xff] %v2153_v4  ;;  %v193_v6 = vsel %vm190_vm1, %v191_v2, %v192_v3  ;;  %s1899_s16 = sld [smem:[#allocation3 + $0x2]]  ;;  %s2157_s25 = smov 125   ;;  %vm207_vm5 = vcmask 140304   ;;  %vm205_vm6 = vcmask 146448   ;;  %vm770_vm7 = vcmask 1045504  }
  0x35   : > { %181 = vst [vmem:[#allocation2 + $0x10] sm:$0xff] %v2153_v4  ;;  %s1901_s17 = sld [smem:[#allocation3 + $0x3]]  ;;  %s2158_s27 = smov 124   ;;  %vm294_vm8 = vcmask 1031168   ;;  %vm245_vm9 = vcmask 1039360   ;;  %vm343_vm10 = vcmask 1022976  }
  0x36   : > { %183 = vst [vmem:[#allocation2 + $0x20] sm:$0xf] %v2153_v4  ;;  %s1903_s24 = sld [smem:[#allocation3 + $0x4]]  ;;  %vm392_vm11 = vcmask 1014784   ;;  %vm1109_vm12 = vcmask 1044480   ;;  %vm1448_vm13 = vcmask 1043456  }
  0x37   : > { %v2285_v5 = vstv %s1897_s23  ;;  %s1902_s26 = sld [smem:[#allocation3 + $0x1c]]  ;;  %185 = vst.msk [vmem:[#allocation2 + $0x28] sm:$0xf] %vm184_vm2, %v2153_v4 }
  0x38   : > { %v2293_v10 = vstv %s1898_s28  ;;  %s1908_s29 = sld [smem:[#allocation3 + $0x1f]] }
  0x39   : > { %v2287_v7 = vld [vmem:[#allocation2 + $0x8] sm:$0xff]  ;;  %v2299_v12 = vstv %s1900_s20  ;;  %s1904_s30 = sld [smem:[#allocation3 + $0x1d]] }
  0x3a   : > { %v230_v8 = vmul.f32 %v2285_v5, %v2287_v7  ;;  %v2291_v9 = vld [vmem:[#allocation2 + $0x18] sm:$0xff]  ;;  %v255_v14 = vmul.f32 %v2293_v10, %v2287_v7  ;;  %v304_v15 = vmul.f32 %v2299_v12, %v2287_v7  ;;  %v2309_v16 = vstv %s1899_s16  ;;  %s1907_s3 = sld [smem:[#allocation3 + $0x6]] }
  0x3b   : > { %v257_v11 = vmul.f32 %v2293_v10, %v2291_v9  ;;  %v232_v13 = vmul.f32 %v2285_v5, %v2291_v9  ;;  %v279_v17 = vmul.f32 %v2309_v16, %v2287_v7  ;;  %v281_v18 = vmul.f32 %v2309_v16, %v2291_v9  ;;  %s1909_s6 = sld [smem:[#allocation3 + $0x7]] }
  0x3c   : > { %196 = vrot.lane.b32.xlu0 %v193_v6, %s2154_s5  ;;  %239 = vrot.lane.b32.xlu2 %v230_v8, %s2155_s14  ;;  %v2316_v19 = vstv %s1901_s17  ;;  %v2323_v21 = vstv %s1903_s24  ;;  %v306_v22 = vmul.f32 %v2299_v12, %v2291_v9  ;;  %s1910_s7 = sld [smem:[#allocation3 + $0x20]] }
  0x3d   : > { %268 = vrot.lane.b32.xlu1 %v257_v11, %s2155_s14  ;;  %v330_v20 = vmul.f32 %v2316_v19, %v2291_v9  ;;  %v328_v23 = vmul.f32 %v2316_v19, %v2287_v7  ;;  %v377_v24 = vmul.f32 %v2323_v21, %v2287_v7  ;;  %v2333_v25 = vstv %s1902_s26  ;;  %s1911_s8 = sld [smem:[#allocation3 + $0x8]] }
  0x3e   : > { %v2336_v26 = vstv %s1908_s29  ;;  %v353_v27 = vmul.f32 %v2333_v25, %v2287_v7  ;;  %v355_v28 = vmul.f32 %v2333_v25, %v2291_v9  ;;  %v2355_v34 = vld [vmem:[#allocation2 + $0x28] sm:$0xf]  ;;  %v379_v37 = vmul.f32 %v2323_v21, %v2291_v9  ;;  %s1912_s23 = sld [smem:[#allocation3 + $0x21]] }
  0x3f   : > { %v2342_v29 = vstv %s1904_s30  ;;  %v499_v31 = vmul.f32 %v2336_v26, %v2287_v7  ;;  %v501_v32 = vmul.f32 %v2336_v26, %v2291_v9  ;;  %v503_v49 = vmul.f32 %v2336_v26, %v2355_v34  ;;  %s1913_s28 = sld [smem:[#allocation3 + $0x9]] }
  0x40   : > { %v404_v30 = vmul.f32 %v2342_v29, %v2291_v9  ;;  %v2353_v33 = vstv %s1907_s3  ;;  %v402_v38 = vmul.f32 %v2342_v29, %v2287_v7  ;;  %s1914_s5 = sld [smem:[#allocation3 + $0x22]] }
  0x41   : > { %v513_v35 = vrot.slane %v499_v31, 1  ;;  %v514_v36 = vrot.slane %v501_v32, 1  ;;  %v461_v39 = vmul.f32 %v2353_v33, %v2287_v7  ;;  %v463_v40 = vmul.f32 %v2353_v33, %v2291_v9  ;;  %s1917_s20 = sld [smem:[#allocation3 + $0xb]] }
  0x42   : > { %v465_v41 = vmul.f32 %v2353_v33, %v2355_v34  ;;  %v2371_v46 = vstv %s1909_s6  ;;  %v518_v52 = vrot.slane %v503_v49, 1  ;;  %v2387_v57 = vstv %s1910_s7  ;;  %s1918_s16 = sld [smem:[#allocation3 + $0x24]] }
  0x43   : > { %v515_v42 = vsel %vm431_vm3, %v513_v35, %v514_v36  ;;  %v475_v43 = vrot.slane %v461_v39, 1  ;;  %v476_v44 = vrot.slane %v463_v40, 1  ;;  %v537_v50 = vmul.f32 %v2371_v46, %v2287_v7  ;;  %s1919_s17 = sld [smem:[#allocation3 + $0xc]] }
  0x44   : > { %243 = vrot.lane.b32.xlu0 %v232_v13, %s2155_s14  ;;  %264 = vrot.lane.b32.xlu2 %v255_v14, %s2155_s14  ;;  %v480_v45 = vrot.slane %v465_v41, 1  ;;  %v539_v51 = vmul.f32 %v2371_v46, %v2291_v9  ;;  %v519_v55 = vsel %vm431_vm3, %v514_v36, %v518_v52  ;;  %v541_v58 = vmul.f32 %v2371_v46, %v2355_v34  ;;  %s2618_s24 = sld [smem:[#allocation3]] }
  0x45   : > { %313 = vrot.lane.b32.xlu1 %v304_v15, %s2156_s19  ;;  %v477_v47 = vsel %vm431_vm3, %v475_v43, %v476_v44  ;;  %v551_v53 = vrot.slane %v537_v50, 1  ;;  %v575_v59 = vmul.f32 %v2387_v57, %v2287_v7  ;;  %v577_v60 = vmul.f32 %v2387_v57, %v2291_v9  ;;  %s2640_s26 = sld [smem:[#allocation3 + $0x19]] }
  0x46   : > { %v481_v48 = vsel %vm431_vm3, %v476_v44, %v480_v45  ;;  %v552_v54 = vrot.slane %v539_v51, 1  ;;  %v579_v61 = vmul.f32 %v2387_v57, %v2355_v34  ;;  %v556_v62 = vrot.slane %v541_v58, 1  ;;  %s1920_s29 = sld [smem:[#allocation3 + $0x25]] }
  0x47   : > { %v589_v63 = vrot.slane %v575_v59, 1  ;;  %v590_v0 = vrot.slane %v577_v60, 1  ;;  %v611_v59 = vstv %s1911_s8  ;;  %s1905_s30 = sld [smem:[#allocation3 + $0x5]] }
  0x48   : > { %v553_v56 = vsel %vm431_vm3, %v551_v53, %v552_v54  ;;  %v594_v1 = vrot.slane %v579_v61, 1  ;;  %v557_v2 = vsel %vm431_vm3, %v552_v54, %v556_v62  ;;  %s2669_s3 = sld [smem:[#allocation3 + $0xd]] }
  0x49   : > { %v591_v3 = vsel %vm431_vm3, %v589_v63, %v590_v0  ;;  %s2721_s6 = sld [smem:[#allocation3 + $0x26]] }
  0x4a   : > { %v595_v4 = vsel %vm431_vm3, %v590_v0, %v594_v1  ;;  %s1906_s7 = sld [smem:[#allocation3 + $0x1e]] }
  0x4b   : > { %s2798_s8 = sld [smem:[#allocation3 + $0xe]] }
  0x4c   : > { %288 = vrot.lane.b32.xlu0 %v279_v17, %s2156_s19  ;;  %292 = vrot.lane.b32.xlu2 %v281_v18, %s2156_s19 }
  0x4d   : > { %341 = vrot.lane.b32.xlu1 %v330_v20, %s2157_s25 }
  0x54   : > { %317 = vrot.lane.b32.xlu0 %v306_v22, %s2156_s19  ;;  %337 = vrot.lane.b32.xlu2 %v328_v23, %s2157_s25 }
  0x55   : > { %386 = vrot.lane.b32.xlu1 %v377_v24, %s2158_s27 }
  0x5c   : > { %362 = vrot.lane.b32.xlu0 %v353_v27, %s2157_s25  ;;  %366 = vrot.lane.b32.xlu2 %v355_v28, %s2157_s25 }
  0x5d   : > { %415 = vrot.lane.b32.xlu1 %v404_v30, %s2158_s27 }
  0x64   : > { %390 = vrot.lane.b32.xlu0 %v379_v37, %s2158_s27  ;;  %411 = vrot.lane.b32.xlu2 %v402_v38, %s2158_s27 }
  0x65   : > { %522 = vrot.lane.b32.xlu1 %v515_v42, %s2155_s14 }
  0x6c   : > { %484 = vrot.lane.b32.xlu0 %v477_v47, %s2155_s14  ;;  %488 = vrot.lane.b32.xlu2 %v481_v48, %s2155_s14 }
  0x6d   : > { %564 = vrot.lane.b32.xlu1 %v557_v2, %s2156_s19 }
  0x74   : > { %526 = vrot.lane.b32.xlu0 %v519_v55, %s2155_s14  ;;  %560 = vrot.lane.b32.xlu2 %v553_v56, %s2156_s19 }
  0x7c   : > { %598 = vrot.lane.b32.xlu0 %v591_v3, %s2156_s19  ;;  %602 = vrot.lane.b32.xlu2 %v595_v4, %s2156_s19 }
  0x96   : > { %v2413_v18 = vpop.permute.xlu2 %239 }
  0x9e   : > { %v2425_v24 = vpop.permute.xlu2 %264 }
  0xa6   : > { %v195_v6 = vpop.permute.xlu0 %194  ;;  %v199_v8 = vpop.permute.xlu1 %198 }
  0xa7   : > { %204 = vst.msk [vmem:[#allocation2] sm:$0xfc] %vm203_vm4, %v195_v6  ;;  %v2442_v36 = vpop.permute.xlu2 %292 }
  0xa8   : > { %208 = vst.msk [vmem:[#allocation2 + $0x20] sm:$0x3] %vm207_vm5, %v199_v8 }
  0xae   : > { %v2403_v11 = vld [vmem:[#allocation2] sm:$0xff]  ;;  %v197_v13 = vpop.permute.xlu0 %196 }
  0xaf   : > { %206 = vst.msk [vmem:[#allocation2 + $0x10] sm:$0xff] %vm205_vm6, %v197_v13  ;;  %v303_v14 = vmul.f32 %v2299_v12, %v2403_v11  ;;  %v278_v15 = vmul.f32 %v2309_v16, %v2403_v11  ;;  %v229_v17 = vmul.f32 %v2285_v5, %v2403_v11  ;;  %v376_v20 = vmul.f32 %v2323_v21, %v2403_v11  ;;  %v2453_v37 = vpop.permute.xlu2 %337  ;;  %v2491_v58 = vpop.permute.xlu1 %268 }
  0xb0   : > { %v352_v22 = vmul.f32 %v2333_v25, %v2403_v11  ;;  %v254_v23 = vmul.f32 %v2293_v10, %v2403_v11  ;;  %v327_v31 = vmul.f32 %v2316_v19, %v2403_v11  ;;  %v612_v0 = vmul.f32 %v611_v59, %v2403_v11 }
  0xb1   : > { %311 = vrot.lane.b32.xlu0 %v303_v14, %s2156_s19  ;;  %286 = vrot.lane.b32.xlu2 %v278_v15, %s2156_s19  ;;  %v574_v1 = vmul.f32 %v2387_v57, %v2403_v11  ;;  %v536_v2 = vmul.f32 %v2371_v46, %v2403_v11  ;;  %v615_v14 = vmul.f32 %v611_v59, %v2291_v9 }
  0xb2   : > { %237 = vrot.lane.b32.xlu1 %v229_v17, %s2155_s14  ;;  %v624_v8 = vrot.slane %v612_v0, 1  ;;  %v617_v15 = vmul.f32 %v611_v59, %v2355_v34 }
  0xb3   : > { %v586_v13 = vrot.slane %v574_v1, 1  ;;  %v548_v17 = vrot.slane %v536_v2, 1 }
  0xb6   : > { %v2427_v27 = vld [vmem:[#allocation2 + $0x10] sm:$0xff]  ;;  %v2468_v40 = vpop.permute.xlu0 %243 }
  0xb7   : > { %v256_v28 = vmul.f32 %v2293_v10, %v2427_v27  ;;  %v231_v30 = vmul.f32 %v2285_v5, %v2427_v27  ;;  %v329_v32 = vmul.f32 %v2316_v19, %v2427_v27  ;;  %v305_v35 = vmul.f32 %v2299_v12, %v2427_v27  ;;  %v2484_v52 = vpop.permute.xlu2 %366 }
  0xb8   : > { %v401_v5 = vmul.f32 %v2342_v29, %v2403_v11  ;;  %v403_v10 = vmul.f32 %v2342_v29, %v2427_v27  ;;  %v378_v19 = vmul.f32 %v2323_v21, %v2427_v27  ;;  %v280_v12 = vmul.f32 %v2309_v16, %v2427_v27  ;;  %v2470_v16 = vld [vmem:[#allocation2 + $0x20] sm:$0xf] }
  0xb9   : > { %384 = vrot.lane.b32.xlu0 %v376_v20, %s2158_s27  ;;  %360 = vrot.lane.b32.xlu2 %v352_v22, %s2157_s25  ;;  %v500_v38 = vmul.f32 %v2336_v26, %v2427_v27  ;;  %v462_v39 = vmul.f32 %v2353_v33, %v2427_v27  ;;  %v498_v21 = vmul.f32 %v2336_v26, %v2403_v11 }
  0xba   : > { %262 = vrot.lane.b32.xlu1 %v254_v23, %s2155_s14  ;;  %v460_v29 = vmul.f32 %v2353_v33, %v2403_v11  ;;  %v540_v45 = vmul.f32 %v2371_v46, %v2470_v16  ;;  %v354_v49 = vmul.f32 %v2333_v25, %v2427_v27  ;;  %v502_v50 = vmul.f32 %v2336_v26, %v2470_v16 }
  0xbb   : > { %v511_v41 = vrot.slane %v500_v38, 1  ;;  %v473_v42 = vrot.slane %v462_v39, 1  ;;  %v510_v43 = vrot.slane %v498_v21, 1  ;;  %v464_v51 = vmul.f32 %v2353_v33, %v2470_v16 }
  0xbc   : > { %v472_v44 = vrot.slane %v460_v29, 1  ;;  %v538_v53 = vmul.f32 %v2371_v46, %v2427_v27  ;;  %v554_v54 = vrot.slane %v540_v45, 1  ;;  %v516_v55 = vrot.slane %v502_v50, 1 }
  0xbd   : > { %v512_v47 = vsel %vm431_vm3, %v510_v43, %v511_v41  ;;  %v478_v25 = vrot.slane %v464_v51, 1  ;;  %v614_v61 = vmul.f32 %v611_v59, %v2427_v27  ;;  %v576_v62 = vmul.f32 %v2387_v57, %v2427_v27 }
  0xbe   : > { %v474_v48 = vsel %vm431_vm3, %v472_v44, %v473_v42  ;;  %v2489_v56 = vpop.permute.xlu0 %288  ;;  %v549_v26 = vrot.slane %v538_v53, 1  ;;  %v517_v33 = vsel %vm431_vm3, %v511_v41, %v516_v55  ;;  %v616_v46 = vmul.f32 %v611_v59, %v2470_v16 }
  0xbf   : > { %v479_v63 = vsel %vm431_vm3, %v473_v42, %v478_v25  ;;  %v2507_v3 = vpop.permute.xlu2 %411  ;;  %v625_v4 = vrot.slane %v614_v61, 1  ;;  %v587_v6 = vrot.slane %v576_v62, 1  ;;  %v613_v29 = vmul.f32 %v611_v59, %v2287_v7 }
  0xc0   : > { %v555_v60 = vsel %vm431_vm3, %v549_v26, %v554_v54  ;;  %v687_v51 = vstv %s1913_s28  ;;  %s1927_s28 = sld [smem:[#allocation3 + $0x10]] }
  0xc1   : > { %266 = vrot.lane.b32.xlu0 %v256_v28, %s2155_s14  ;;  %241 = vrot.lane.b32.xlu2 %v231_v30, %s2155_s14  ;;  %v626_v22 = vsel %vm431_vm3, %v624_v8, %v625_v4  ;;  %v588_v23 = vsel %vm431_vm3, %v586_v13, %v587_v6  ;;  %v2516_v28 = vpop.permute.xlu1 %313  ;;  %v550_v30 = vsel %vm431_vm3, %v548_v17, %v549_v26 }
  0xc2   : > { %335 = vrot.lane.b32.xlu1 %v327_v31, %s2157_s25  ;;  %v578_v31 = vmul.f32 %v2387_v57, %v2470_v16  ;;  %v689_v55 = vmul.f32 %v687_v51, %v2287_v7  ;;  %v691_v25 = vmul.f32 %v687_v51, %v2291_v9  ;;  %v693_v13 = vmul.f32 %v687_v51, %v2355_v34 }
  0xc4   : > { %v703_v61 = vrot.slane %v689_v55, 1  ;;  %v704_v62 = vrot.slane %v691_v25, 1  ;;  %v798_v55 = vstv %s1917_s20  ;;  %s1929_s20 = sld [smem:[#allocation3 + $0x11]] }
  0xc5   : > { %v800_v25 = vmul.f32 %v798_v55, %v2287_v7 }
  0xc6   : > { %v2511_v20 = vpop.permute.xlu0 %317 }
  0xc9   : > { %339 = vrot.lane.b32.xlu0 %v329_v32, %s2157_s25  ;;  %315 = vrot.lane.b32.xlu2 %v305_v35, %s2156_s19  ;;  %v628_v32 = vrot.slane %v615_v14, 1  ;;  %v632_v35 = vrot.slane %v617_v15, 1  ;;  %v725_v15 = vstv %s1914_s5  ;;  %s1928_s5 = sld [smem:[#allocation3 + $0x29]] }
  0xca   : > { %409 = vrot.lane.b32.xlu1 %v401_v5, %s2158_s27  ;;  %v630_v5 = vrot.slane %v616_v46, 1 }
  0xcb   : > { %v633_v38 = vsel %vm431_vm3, %v628_v32, %v632_v35 }
  0xcc   : > { %v631_v57 = vsel %vm431_vm3, %v625_v4, %v630_v5 }
  0xce   : > { %v2535_v43 = vpop.permute.xlu0 %362 }
  0xd1   : > { %413 = vrot.lane.b32.xlu0 %v403_v10, %s2158_s27  ;;  %388 = vrot.lane.b32.xlu2 %v378_v19, %s2158_s27  ;;  %v592_v10 = vrot.slane %v578_v31, 1  ;;  %v2524_v19 = vpop.permute.xlu2 %488  ;;  %v726_v31 = vmul.f32 %v725_v15, %v2403_v11 }
  0xd2   : > { %290 = vrot.lane.b32.xlu1 %v280_v12, %s2156_s19  ;;  %v649_v12 = vstv %s1912_s23  ;;  %s2840_s23 = sld [smem:[#allocation3 + $0x27]] }
  0xd3   : > { %v651_v39 = vmul.f32 %v649_v12, %v2287_v7  ;;  %v653_v21 = vmul.f32 %v649_v12, %v2291_v9  ;;  %v654_v41 = vmul.f32 %v649_v12, %v2470_v16  ;;  %v593_v42 = vsel %vm431_vm3, %v587_v6, %v592_v10 }
  0xd4   : > { %v652_v44 = vmul.f32 %v649_v12, %v2427_v27  ;;  %v650_v0 = vmul.f32 %v649_v12, %v2403_v11  ;;  %v705_v6 = vsel %vm431_vm3, %v703_v61, %v704_v62  ;;  %v655_v17 = vmul.f32 %v649_v12, %v2355_v34 }
  0xd5   : > { %v665_v45 = vrot.slane %v651_v39, 1  ;;  %v668_v50 = vrot.slane %v654_v41, 1  ;;  %v738_v12 = vrot.slane %v726_v31, 1 }
  0xd6   : > { %v663_v53 = vrot.slane %v652_v44, 1  ;;  %v2554_v1 = vpop.permute.xlu0 %390  ;;  %v662_v14 = vrot.slane %v650_v0, 1  ;;  %v670_v35 = vrot.slane %v655_v17, 1  ;;  %v692_v44 = vmul.f32 %v687_v51, %v2470_v16 }
  0xd7   : > { %v801_v0 = vmul.f32 %v798_v55, %v2427_v27  ;;  %v836_v17 = vstv %s1918_s16  ;;  %s1930_s16 = sld [smem:[#allocation3 + $0x2a]] }
  0xd8   : > { %v664_v46 = vsel %vm431_vm3, %v662_v14, %v663_v53 }
  0xd9   : > { %520 = vrot.lane.b32.xlu0 %v512_v47, %s2155_s14  ;;  %482 = vrot.lane.b32.xlu2 %v474_v48, %s2155_s14  ;;  %v666_v47 = vrot.slane %v653_v21, 1  ;;  %v2539_v48 = vpop.permute.xlu1 %341  ;;  %v2545_v59 = vpop.permute.xlu2 %560  ;;  %v729_v21 = vmul.f32 %v725_v15, %v2291_v9 }
  0xda   : > { %364 = vrot.lane.b32.xlu1 %v354_v49, %s2157_s25  ;;  %v627_v49 = vrot.slane %v613_v29, 1  ;;  %v731_v29 = vmul.f32 %v725_v15, %v2355_v34 }
  0xdb   : > { %v667_v54 = vsel %vm431_vm3, %v665_v45, %v666_v47  ;;  %v742_v45 = vrot.slane %v729_v21, 1 }
  0xdc   : > { %v629_v26 = vsel %vm431_vm3, %v627_v49, %v628_v32  ;;  %v708_v32 = vrot.slane %v693_v13, 1  ;;  %v746_v49 = vrot.slane %v731_v29, 1  ;;  %v837_v29 = vmul.f32 %v836_v17, %v2403_v11 }
  0xde   : > { %v2570_v10 = vpop.permute.xlu0 %484 }
  0xe1   : > { %562 = vrot.lane.b32.xlu0 %v555_v60, %s2156_s19  ;;  %524 = vrot.lane.b32.xlu2 %v517_v33, %s2155_s14  ;;  %v669_v60 = vsel %vm431_vm3, %v663_v53, %v668_v50  ;;  %v690_v33 = vmul.f32 %v687_v51, %v2427_v27  ;;  %v2556_v4 = vpop.permute.xlu1 %386 }
  0xe2   : > { %486 = vrot.lane.b32.xlu1 %v479_v63, %s2155_s14  ;;  %v688_v63 = vmul.f32 %v687_v51, %v2403_v11  ;;  %v727_v51 = vmul.f32 %v725_v15, %v2287_v7 }
  0xe3   : > { %v701_v2 = vrot.slane %v690_v33, 1 }
  0xe4   : > { %v700_v8 = vrot.slane %v688_v63, 1  ;;  %v741_v14 = vrot.slane %v727_v51, 1  ;;  %v216_v51 = vstv %s2618_s24  ;;  %s1915_s24 = sld [smem:[#allocation3 + $0xa]] }
  0xe6   : > { %v743_v31 = vsel %vm431_vm3, %v741_v14, %v742_v45 }
  0xe9   : > { %634 = vrot.lane.b32.xlu0 %v626_v22, %s2157_s25  ;;  %596 = vrot.lane.b32.xlu2 %v588_v23, %s2156_s19  ;;  %v702_v22 = vsel %vm431_vm3, %v700_v8, %v701_v2  ;;  %v728_v23 = vmul.f32 %v725_v15, %v2427_v27  ;;  %v2573_v39 = vpop.permute.xlu1 %415 }
  0xea   : > { %558 = vrot.lane.b32.xlu1 %v550_v30, %s2156_s19  ;;  %v2566_v30 = vpop.permute.xlu2 %602 }
  0xeb   : > { %v739_v5 = vrot.slane %v728_v23, 1 }
  0xed   : > { %v740_v41 = vsel %vm431_vm3, %v738_v12, %v739_v5 }
  0xf1   : > { %640 = vrot.lane.b32.xlu0 %v633_v38, %s2157_s25  ;;  %638 = vrot.lane.b32.xlu2 %v631_v57, %s2157_s25  ;;  %v709_v38 = vsel %vm431_vm3, %v704_v62, %v708_v32  ;;  %v671_v57 = vsel %vm431_vm3, %v666_v47, %v670_v35  ;;  %v747_v47 = vsel %vm431_vm3, %v742_v45, %v746_v49  ;;  %v2595_v61 = vpop.permute.xlu1 %522  ;;  %v849_v45 = vrot.slane %v837_v29, 2 }
  0xf2   : > { %600 = vrot.lane.b32.xlu1 %v593_v42, %s2156_s19  ;;  %v730_v42 = vmul.f32 %v725_v15, %v2470_v16  ;;  %v803_v62 = vmul.f32 %v798_v55, %v2470_v16  ;;  %v2612_v35 = vmul.f32 %v836_v17, %v2427_v27  ;;  %v874_v49 = vstv %s1919_s17  ;;  %s1916_s17 = sld [smem:[#allocation3 + $0x23]] }
  0xf4   : > { %v744_v53 = vrot.slane %v730_v42, 1  ;;  %v817_v15 = vrot.slane %v803_v62, 2  ;;  %v850_v42 = vrot.slane %v2612_v35, 2  ;;  %v875_v62 = vmul.f32 %v874_v49, %v2403_v11 }
  0xf6   : > { %v745_v33 = vsel %vm431_vm3, %v739_v5, %v744_v53  ;;  %v842_v53 = vmul.f32 %v836_v17, %v2355_v34 }
  0xf9   : > { %676 = vrot.lane.b32.xlu0 %v669_v60, %s2157_s25  ;;  %674 = vrot.lane.b32.xlu2 %v667_v54, %s2157_s25  ;;  %v706_v54 = vrot.slane %v692_v44, 1  ;;  %v2591_v60 = vpop.permute.xlu0 %526  ;;  %v2621_v12 = vpop.permute.xlu1 %564 }
  0xfa   : > { %636 = vrot.lane.b32.xlu1 %v629_v26, %s2157_s25  ;;  %v2589_v26 = vmul.f32 %v798_v55, %v2291_v9 }
  0xfb   : > { %v707_v63 = vsel %vm431_vm3, %v701_v2, %v706_v54  ;;  %v840_v2 = vmul.f32 %v836_v17, %v2291_v9 }
  0xfc   : > { %v815_v8 = vrot.slane %v2589_v26, 2  ;;  %v877_v26 = vmul.f32 %v874_v49, %v2427_v27 }
  0xfd   : > { %v853_v21 = vrot.slane %v840_v2, 2 }
 0x101   : > { %712 = vrot.lane.b32.xlu0 %v705_v6, %s2158_s27  ;;  %710 = vrot.lane.b32.xlu2 %v702_v22, %s2158_s27  ;;  %v814_v6 = vrot.slane %v800_v25, 2  ;;  %v812_v22 = vrot.slane %v801_v0, 2  ;;  %v2616_v5 = vpop.permute.xlu0 %598  ;;  %v851_v25 = vsel %vm770_vm7, %v849_v45, %v850_v42  ;;  %v879_v45 = vmul.f32 %v874_v49, %v2470_v16 }
 0x102   : > { %672 = vrot.lane.b32.xlu1 %v664_v46, %s2157_s25  ;;  %v838_v46 = vmul.f32 %v836_v17, %v2287_v7 }
 0x103   : > { %v816_v23 = vsel %vm770_vm7, %v814_v6, %v815_v8  ;;  %v818_v32 = vsel %vm770_vm7, %v812_v22, %v817_v15  ;;  %v217_v15 = vmul.f32 %v216_v51, %v2403_v11 }
 0x109   : > { %748 = vrot.lane.b32.xlu0 %v740_v41, %s2158_s27  ;;  %716 = vrot.lane.b32.xlu2 %v709_v38, %s2158_s27  ;;  %v852_v38 = vrot.slane %v838_v46, 2  ;;  %v799_v41 = vmul.f32 %v798_v55, %v2403_v11  ;;  %v887_v46 = vrot.slane %v875_v62, 2 }
 0x10a   : > { %678 = vrot.lane.b32.xlu1 %v671_v57, %s2157_s25 }
 0x10b   : > { %v2584_v50 = vpop.permute.xlu2 %286  ;;  %v854_v44 = vsel %vm770_vm7, %v852_v38, %v853_v21  ;;  %v811_v54 = vrot.slane %v799_v41, 2  ;;  %v880_v38 = vmul.f32 %v874_v49, %v2355_v34 }
 0x10c   : > { %v295_v29 = vsel %vm294_vm8, %v2584_v50, %v2489_v56 }
 0x111   : > { %754 = vrot.lane.b32.xlu0 %v747_v47, %s2158_s27  ;;  %752 = vrot.lane.b32.xlu2 %v745_v33, %s2158_s27  ;;  %v804_v47 = vmul.f32 %v798_v55, %v2355_v34  ;;  %v813_v33 = vsel %vm770_vm7, %v811_v54, %v812_v22  ;;  %v857_v55 = vrot.slane %v842_v53, 2  ;;  %v841_v53 = vmul.f32 %v836_v17, %v2470_v16 }
 0x112   : > { %714 = vrot.lane.b32.xlu1 %v707_v63, %s2158_s27 }
 0x113   : > { %v2604_v13 = vpop.permute.xlu2 %360  ;;  %v819_v6 = vrot.slane %v804_v47, 2  ;;  %v895_v47 = vrot.slane %v880_v38, 2  ;;  %v855_v62 = vrot.slane %v841_v53, 2 }
 0x114   : > { %v368_v38 = vsel %vm343_vm10, %v2604_v13, %v2535_v43 }
 0x115   : > { %v820_v41 = vsel %vm770_vm7, %v815_v8, %v819_v6 }
 0x119   : > { %825 = vrot.lane.b32.xlu0 %v818_v32, %s2155_s14  ;;  %823 = vrot.lane.b32.xlu2 %v816_v23, %s2155_s14  ;;  %v888_v23 = vrot.slane %v877_v26, 2  ;;  %v2652_v32 = vmul.f32 %v874_v49, %v2291_v9  ;;  %v893_v26 = vrot.slane %v879_v45, 2  ;;  %v2707_v45 = vstv %s2669_s3  ;;  %s1934_s3 = sld [smem:[#allocation3 + $0x2c]] }
 0x11a   : > { %750 = vrot.lane.b32.xlu1 %v743_v31, %s2158_s27  ;;  %v858_v31 = vsel %vm770_vm7, %v853_v21, %v857_v55  ;;  %v222_v21 = vstv %s2640_s26  ;;  %s1931_s26 = sld [smem:[#allocation3 + $0x12]] }
 0x11b   : > { %v2624_v57 = vpop.permute.xlu2 %241  ;;  %v891_v54 = vrot.slane %v2652_v32, 2 }
 0x121   : > { %861 = vrot.lane.b32.xlu0 %v854_v44, %s2155_s14  ;;  %859 = vrot.lane.b32.xlu2 %v851_v25, %s2155_s14  ;;  %v889_v44 = vsel %vm770_vm7, %v887_v46, %v888_v23  ;;  %v223_v25 = vmul.f32 %v222_v21, %v2403_v11  ;;  %v876_v46 = vmul.f32 %v874_v49, %v2287_v7 }
 0x122   : > { %821 = vrot.lane.b32.xlu1 %v813_v33, %s2155_s14  ;;  %v2672_v33 = vstv %s1920_s29  ;;  %s3054_s29 = sld [smem:[#allocation3 + $0x2b]] }
 0x123   : > { %v312_v63 = vpop.permute.xlu0 %311  ;;  %v2643_v0 = vpop.permute.xlu2 %315  ;;  %v914_v55 = vmul.f32 %v2672_v33, %v2287_v7  ;;  %v2680_v6 = vmul.f32 %v2672_v33, %v2291_v9  ;;  %v917_v32 = vmul.f32 %v2672_v33, %v2470_v16  ;;  %v890_v13 = vrot.slane %v876_v46, 2 }
 0x124   : > { %v238_v14 = vpop.permute.xlu1 %237 }
 0x125   : > { %v246_v22 = vsel %vm245_vm9, %v238_v14, %v2413_v18  ;;  %v928_v49 = vrot.slane %v914_v55, 2  ;;  %v952_v55 = vmul.f32 %v2707_v45, %v2287_v7  ;;  %v951_v7 = vmul.f32 %v2707_v45, %v2403_v11 }
 0x126   : > { %v250_v2 = vadd.f32 %v246_v22, %v217_v15  ;;  %v896_v15 = vsel %vm770_vm7, %v891_v54, %v895_v47  ;;  %v319_v22 = vsel %vm294_vm8, %v312_v63, %v2516_v28  ;;  %v856_v28 = vsel %vm770_vm7, %v850_v42, %v855_v62 }
 0x127   : > { %v929_v63 = vrot.slane %v2680_v6, 2 }
 0x128   : > { %v299_v18 = vadd.f32 %v295_v29, %v250_v2  ;;  %v2703_v29 = vstv %s1905_s30  ;;  %s1933_s30 = sld [smem:[#allocation3 + $0x13]] }
 0x129   : > { %897 = vrot.lane.b32.xlu0 %v889_v44, %s2156_s19  ;;  %865 = vrot.lane.b32.xlu2 %v858_v31, %s2155_s14  ;;  %v2689_v31 = vmul.f32 %v2672_v33, %v2427_v27  ;;  %v2711_v35 = vmul.f32 %v2703_v29, %v2427_v27 }
 0x12a   : > { %827 = vrot.lane.b32.xlu1 %v820_v41, %s2155_s14  ;;  %v224_v41 = vmul.f32 %v222_v21, %v2427_v27 }
 0x12b   : > { %v385_v56 = vpop.permute.xlu0 %384  ;;  %v2667_v50 = vpop.permute.xlu2 %388  ;;  %v926_v47 = vrot.slane %v2689_v31, 2  ;;  %v433_v46 = vrot.slane %v2711_v35, 1  ;;  %v913_v31 = vmul.f32 %v2672_v33, %v2403_v11 }
 0x12c   : > { %v263_v8 = vpop.permute.xlu1 %262 }
 0x12d   : > { %v270_v17 = vsel %vm245_vm9, %v263_v8, %v2425_v24  ;;  %v894_v24 = vsel %vm770_vm7, %v888_v23, %v893_v26  ;;  %v931_v8 = vrot.slane %v917_v32, 2  ;;  %v930_v26 = vsel %vm770_vm7, %v928_v49, %v929_v63 }
 0x12e   : > { %v274_v14 = vadd.f32 %v270_v17, %v223_v25  ;;  %v425_v17 = vmul.f32 %v2703_v29, %v2403_v11 }
 0x130   : > { %v323_v2 = vadd.f32 %v319_v22, %v274_v14  ;;  %v393_v14 = vsel %vm392_vm11, %v385_v56, %v2556_v4  ;;  %v432_v4 = vrot.slane %v425_v17, 1  ;;  %v918_v17 = vmul.f32 %v2672_v33, %v2355_v34 }
 0x131   : > { %903 = vrot.lane.b32.xlu0 %v896_v15, %s2156_s19  ;;  %901 = vrot.lane.b32.xlu2 %v894_v24, %s2156_s19  ;;  %v892_v15 = vsel %vm770_vm7, %v890_v13, %v891_v54  ;;  %v932_v24 = vsel %vm770_vm7, %v926_v47, %v931_v8  ;;  %v963_v13 = vrot.slane %v951_v7, 2 }
 0x132   : > { %863 = vrot.lane.b32.xlu1 %v856_v28, %s2155_s14  ;;  %v372_v23 = vadd.f32 %v368_v38, %v323_v2  ;;  %v434_v32 = vsel %vm431_vm3, %v432_v4, %v433_v46 }
 0x133   : > { %v267_v44 = vpop.permute.xlu0 %266  ;;  %v483_v43 = vpop.permute.xlu2 %482 }
 0x134   : > { %v271_v42 = vsel %vm245_vm9, %v267_v44, %v2491_v58  ;;  %v336_v53 = vpop.permute.xlu1 %335  ;;  %v320_v58 = vsel %vm294_vm8, %v2643_v0, %v2511_v20  ;;  %v2741_v20 = vmul.f32 %v2707_v45, %v2427_v27  ;;  %v966_v0 = vrot.slane %v952_v55, 2 }
 0x135   : > { %v275_v25 = vadd.f32 %v271_v42, %v224_v41  ;;  %v344_v21 = vsel %vm343_vm10, %v336_v53, %v2453_v37  ;;  %v954_v37 = vmul.f32 %v2707_v45, %v2291_v9  ;;  %v490_v41 = vsel %vm245_vm9, %v483_v43, %v2570_v10 }
 0x136   : > { %v348_v62 = vadd.f32 %v344_v21, %v299_v18  ;;  %v964_v28 = vrot.slane %v2741_v20, 2  ;;  %v2761_v42 = vstv %s2721_s6  ;;  %v442_v43 = vstv %s1906_s7  ;;  %s1937_s6 = sld [smem:[#allocation3 + $0x15]] }
 0x137   : > { %v2735_v22 = vadd.f32 %v320_v58, %v275_v25  ;;  %v967_v18 = vrot.slane %v954_v37, 2  ;;  %v956_v25 = vmul.f32 %v2707_v45, %v2355_v34  ;;  %v989_v10 = vmul.f32 %v2761_v42, %v2403_v11  ;;  %s1938_s7 = sld [smem:[#allocation3 + $0x2e]] }
 0x138   : > { %v397_v2 = vadd.f32 %v393_v14, %v348_v62  ;;  %v247_v58 = vsel %vm245_vm9, %v2624_v57, %v2468_v40  ;;  %v2786_v62 = vmul.f32 %v442_v43, %v2427_v27  ;;  %v218_v55 = vmul.f32 %v216_v51, %v2427_v27 }
 0x139   : > { %939 = vrot.lane.b32.xlu0 %v932_v24, %s2156_s19  ;;  %937 = vrot.lane.b32.xlu2 %v930_v26, %s2156_s19  ;;  %v968_v8 = vsel %vm770_vm7, %v966_v0, %v967_v18  ;;  %v925_v26 = vrot.slane %v913_v31, 2  ;;  %v971_v37 = vrot.slane %v956_v25, 2  ;;  %v443_v7 = vmul.f32 %v442_v43, %v2403_v11 }
 0x13a   : > { %899 = vrot.lane.b32.xlu1 %v892_v15, %s2156_s19  ;;  %v439_v49 = vadd.f32 %v434_v32, %v397_v2  ;;  %v933_v2 = vrot.slane %v918_v17, 2  ;;  %v251_v24 = vadd.f32 %v247_v58, %v218_v55  ;;  %v1001_v4 = vrot.slane %v989_v10, 2 }
 0x13b   : > { %v340_v54 = vpop.permute.xlu0 %339  ;;  %v2748_v56 = vpop.permute.xlu2 %524  ;;  %v927_v33 = vsel %vm770_vm7, %v925_v26, %v926_v47  ;;  %v450_v0 = vrot.slane %v2786_v62, 1  ;;  %v972_v32 = vsel %vm770_vm7, %v967_v18, %v971_v37  ;;  %v993_v18 = vmul.f32 %v2761_v42, %v2470_v16 }
 0x13c   : > { %v410_v38 = vpop.permute.xlu1 %409  ;;  %v2766_v21 = vadd.f32 %v490_v41, %v439_v49  ;;  %v345_v49 = vsel %vm343_vm10, %v340_v54, %v2539_v48  ;;  %v445_v48 = vmul.f32 %v442_v43, %v2470_v16  ;;  %v427_v17 = vmul.f32 %v2703_v29, %v2470_v16  ;;  %v2844_v29 = vld [vmem:[#allocation2 + $0x8] sm:$0xff] }
 0x13d   : > { %v417_v44 = vsel %vm392_vm11, %v410_v38, %v2507_v3  ;;  %v965_v3 = vsel %vm770_vm7, %v963_v13, %v964_v28  ;;  %v994_v38 = vmul.f32 %v2761_v42, %v2355_v34  ;;  %v449_v13 = vrot.slane %v443_v7, 1 }
 0x13e   : > { %v421_v53 = vadd.f32 %v417_v44, %v372_v23  ;;  %v2777_v23 = vmul.f32 %v2761_v42, %v2427_v27  ;;  %v955_v34 = vmul.f32 %v2707_v45, %v2470_v16  ;;  %v1007_v10 = vrot.slane %v993_v18, 2 }
 0x13f   : > { %v451_v6 = vsel %vm431_vm3, %v449_v13, %v450_v0  ;;  %v1009_v54 = vrot.slane %v994_v38, 2 }
 0x140   : > { %v1002_v47 = vrot.slane %v2777_v23, 2  ;;  %v2836_v23 = vstv %s2798_s8  ;;  %s1939_s8 = sld [smem:[#allocation3 + $0x16]] }
 0x141   : > { %975 = vrot.lane.b32.xlu0 %v968_v8, %s2157_s25  ;;  %973 = vrot.lane.b32.xlu2 %v965_v3, %s2157_s25  ;;  %v394_v8 = vsel %vm392_vm11, %v2667_v50, %v2554_v1  ;;  %v456_v1 = vadd.f32 %v451_v6, %v421_v53  ;;  %v452_v53 = vrot.slane %v445_v48, 1  ;;  %v2850_v37 = vmul.f32 %v2836_v23, %v2291_v9 }
 0x142   : > { %935 = vrot.lane.b32.xlu1 %v927_v33, %s2156_s19  ;;  %v1003_v44 = vsel %vm770_vm7, %v1001_v4, %v1002_v47  ;;  %v969_v33 = vrot.slane %v955_v34, 2 }
 0x143   : > { %v414_v14 = vpop.permute.xlu0 %413  ;;  %v597_v15 = vpop.permute.xlu2 %596 }
 0x144   : > { %v2794_v40 = vsel %vm294_vm8, %v597_v15, %v2616_v5  ;;  %v291_v57 = vpop.permute.xlu1 %290  ;;  %v2806_v5 = vmul.f32 %v2761_v42, %v2291_v9  ;;  %v435_v15 = vrot.slane %v427_v17, 1  ;;  %v970_v9 = vsel %vm770_vm7, %v964_v28, %v969_v33 }
 0x145   : > { %v296_v51 = vsel %vm294_vm8, %v291_v57, %v2442_v36  ;;  %v934_v36 = vsel %vm770_vm7, %v929_v63, %v933_v2  ;;  %v990_v2 = vmul.f32 %v2844_v29, %v2761_v42  ;;  %v1031_v57 = vmul.f32 %v2836_v23, %v2470_v16 }
 0x146   : > { %v300_v31 = vadd.f32 %v296_v51, %v251_v24  ;;  %v1005_v63 = vrot.slane %v2806_v5, 2  ;;  %v529_v51 = vsel %vm245_vm9, %v2748_v56, %v2591_v60  ;;  %v436_v28 = vsel %vm431_vm3, %v433_v46, %v435_v15 }
 0x147   : > { %v1045_v38 = vrot.slane %v1031_v57, 2  ;;  %v1064_v60 = vstv %s2840_s23  ;;  %s1940_s23 = sld [smem:[#allocation3 + $0x2f]] }
 0x148   : > { %v349_v41 = vadd.f32 %v345_v49, %v300_v31  ;;  %v1010_v55 = vsel %vm770_vm7, %v1005_v63, %v1009_v54  ;;  %v1004_v31 = vrot.slane %v990_v2, 2  ;;  %v1066_v46 = vmul.f32 %v2844_v29, %v1064_v60 }
 0x149   : > { %1011 = vrot.lane.b32.xlu0 %v1003_v44, %s2157_s25  ;;  %979 = vrot.lane.b32.xlu2 %v972_v32, %s2157_s25  ;;  %v1065_v34 = vmul.f32 %v1064_v60, %v2403_v11 }
 0x14a   : > { %941 = vrot.lane.b32.xlu1 %v934_v36, %s2156_s19  ;;  %v398_v25 = vadd.f32 %v394_v8, %v349_v41  ;;  %v1006_v18 = vsel %vm770_vm7, %v1004_v31, %v1005_v63  ;;  %v2895_v8 = vmul.f32 %v1064_v60, %v2427_v27  ;;  %v1080_v48 = vrot.slane %v1066_v46, 2 }
 0x14b   : > { %v521_v26 = vpop.permute.xlu0 %520  ;;  %v2829_v50 = vpop.permute.xlu2 %638  ;;  %v1027_v63 = vmul.f32 %v2836_v23, %v2403_v11 }
 0x14c   : > { %v528_v45 = vsel %vm245_vm9, %v521_v26, %v2595_v61  ;;  %v365_v3 = vpop.permute.xlu1 %364  ;;  %v1028_v61 = vmul.f32 %v2844_v29, %v2836_v23  ;;  %v440_v32 = vadd.f32 %v436_v28, %v398_v25 }
 0x14d   : > { %v532_v43 = vadd.f32 %v528_v45, %v456_v1  ;;  %v369_v58 = vsel %vm343_vm10, %v365_v3, %v2484_v52  ;;  %v418_v52 = vsel %vm392_vm11, %v414_v14, %v2573_v39  ;;  %v1029_v39 = vmul.f32 %v2836_v23, %v2427_v27 }
 0x14e   : > { %v373_v62 = vadd.f32 %v369_v58, %v2735_v22  ;;  %v1008_v22 = vsel %vm770_vm7, %v1002_v47, %v1007_v10  ;;  %v453_v14 = vsel %vm431_vm3, %v450_v0, %v452_v53  ;;  %v1042_v42 = vrot.slane %v1028_v61, 2  ;;  %v2910_v58 = vld [vmem:[#allocation2 + $0x28] sm:$0xf] }
 0x14f   : > { %v1043_v47 = vrot.slane %v2850_v37, 2  ;;  %v1040_v41 = vrot.slane %v1029_v39, 2  ;;  %v2883_v56 = vadd.f32 %v2794_v40, %v532_v43  ;;  %v1078_v1 = vrot.slane %v2895_v8, 2 }
 0x150   : > { %v422_v24 = vadd.f32 %v418_v52, %v373_v62  ;;  %v1077_v45 = vrot.slane %v1065_v34, 2  ;;  %v1137_v43 = vstv %s1927_s28  ;;  %v1070_v33 = vmul.f32 %v2910_v58, %v1064_v60  ;;  %s1925_s28 = sld [smem:[#allocation3 + $0xf]] }
 0x151   : > { %1017 = vrot.lane.b32.xlu0 %v1010_v55, %s2157_s25  ;;  %1015 = vrot.lane.b32.xlu2 %v1008_v22, %s2157_s25  ;;  %v1044_v35 = vsel %vm770_vm7, %v1042_v42, %v1043_v47  ;;  %v1039_v53 = vrot.slane %v1027_v63, 2  ;;  %v1032_v62 = vmul.f32 %v2910_v58, %v2836_v23  ;;  %v1140_v61 = vmul.f32 %v1137_v43, %v2427_v27 }
 0x152   : > { %977 = vrot.lane.b32.xlu1 %v970_v9, %s2157_s25  ;;  %v457_v7 = vadd.f32 %v453_v14, %v422_v24  ;;  %v1079_v55 = vsel %vm770_vm7, %v1077_v45, %v1078_v1  ;;  %v1085_v52 = vrot.slane %v1070_v33, 2  ;;  %v1142_v28 = vmul.f32 %v1137_v43, %v2470_v16 }
 0x153   : > { %v563_v4 = vpop.permute.xlu0 %562  ;;  %v2872_v20 = vpop.permute.xlu2 %674  ;;  %v1047_v24 = vrot.slane %v1032_v62, 2  ;;  %v1151_v57 = vrot.slane %v1140_v61, 3  ;;  %v1139_v46 = vmul.f32 %v2844_v29, %v1137_v43  ;;  %v1213_v45 = vstv %s1929_s20  ;;  %v2979_v62 = vld [vmem:[#allocation2 + $0x10] sm:$0xff]  ;;  %v2987_v61 = vld [vmem:[#allocation2] sm:$0xff]  ;;  %s1942_s20 = sld [smem:[#allocation3 + $0x30]] }
 0x154   : > { %v567_v0 = vsel %vm294_vm8, %v563_v4, %v2621_v12  ;;  %v487_v5 = vpop.permute.xlu1 %486  ;;  %v533_v49 = vadd.f32 %v529_v51, %v457_v7  ;;  %v2889_v12 = vld [vmem:[#allocation2 + $0x18] sm:$0xff]  ;;  %v1143_v51 = vmul.f32 %v2910_v58, %v1137_v43 }
 0x155   : > { %v491_v36 = vsel %vm245_vm9, %v487_v5, %v2524_v19  ;;  %v1068_v13 = vmul.f32 %v2889_v12, %v1064_v60  ;;  %v1046_v19 = vsel %vm770_vm7, %v1040_v41, %v1045_v38  ;;  %v1141_v7 = vmul.f32 %v2889_v12, %v1137_v43 }
 0x156   : > { %v495_v44 = vadd.f32 %v491_v36, %v440_v32  ;;  %v1156_v38 = vrot.slane %v1142_v28, 3  ;;  %v1175_v36 = vstv %s1928_s5  ;;  %s1941_s5 = sld [smem:[#allocation3 + $0x17]] }
 0x157   : > { %v1081_v6 = vrot.slane %v1068_v13, 2  ;;  %v1154_v31 = vrot.slane %v1141_v7, 3  ;;  %v1178_v8 = vmul.f32 %v1175_v36, %v2427_v27  ;;  %v1219_v7 = vmul.f32 %v2910_v58, %v1213_v45 }
 0x158   : > { %v571_v40 = vadd.f32 %v567_v0, %v495_v44  ;;  %v1158_v0 = vrot.slane %v1143_v51, 3  ;;  %v1157_v13 = vsel %vm1109_vm12, %v1151_v57, %v1156_v38 }
 0x159   : > { %1053 = vrot.lane.b32.xlu0 %v1046_v19, %s2158_s27  ;;  %1051 = vrot.lane.b32.xlu2 %v1044_v35, %s2158_s27  ;;  %v1082_v10 = vsel %vm770_vm7, %v1080_v48, %v1081_v6  ;;  %v1086_v42 = vsel %vm770_vm7, %v1081_v6, %v1085_v52  ;;  %v1177_v35 = vmul.f32 %v2844_v29, %v1175_v36  ;;  %v1189_v27 = vrot.slane %v1178_v8, 3  ;;  %v3028_v8 = vld [vmem:[#allocation2 + $0x20] sm:$0xf] }
 0x15a   : > { %1013 = vrot.lane.b32.xlu1 %v1006_v18, %s2157_s25  ;;  %v1159_v44 = vsel %vm1109_vm12, %v1154_v31, %v1158_v0  ;;  %v1180_v18 = vmul.f32 %v1175_v36, %v2470_v16 }
 0x15b   : > { %v635_v54 = vpop.permute.xlu0 %634  ;;  %v2901_v25 = vpop.permute.xlu2 %710 }
 0x15c   : > { %v559_v26 = vpop.permute.xlu1 %558 }
 0x15d   : > { %v566_v17 = vsel %vm294_vm8, %v559_v26, %v2545_v59  ;;  %v1041_v59 = vsel %vm770_vm7, %v1039_v53, %v1040_v41  ;;  %v1194_v26 = vrot.slane %v1180_v18, 3 }
 0x15e   : > { %v570_v3 = vadd.f32 %v566_v17, %v2766_v21  ;;  %v1138_v21 = vmul.f32 %v1137_v43, %v2403_v11  ;;  %v1215_v43 = vmul.f32 %v2844_v29, %v1213_v45 }
 0x15f   : > { %v1195_v53 = vsel %vm1109_vm12, %v1189_v27, %v1194_v26 }
 0x160   : > { %v1150_v14 = vrot.slane %v1138_v21, 3 }
 0x161   : > { %1089 = vrot.lane.b32.xlu0 %v1082_v10, %s2158_s27  ;;  %1087 = vrot.lane.b32.xlu2 %v1079_v55, %s2158_s27 }
 0x162   : > { %1049 = vrot.lane.b32.xlu1 %v1041_v59, %s2158_s27  ;;  %v1152_v4 = vsel %vm1109_vm12, %v1150_v14, %v1151_v57  ;;  %v1214_v59 = vmul.f32 %v2987_v61, %v1213_v45  ;;  %v1251_v57 = vstv %s1930_s16  ;;  %s1943_s16 = sld [smem:[#allocation3 + $0x18]] }
 0x163   : > { %v641_v15 = vpop.permute.xlu0 %640  ;;  %v2922_v2 = vpop.permute.xlu2 %716  ;;  %v1254_v28 = vmul.f32 %v2979_v62, %v1251_v57  ;;  %v1257_v18 = vmul.f32 %v2910_v58, %v1251_v57 }
 0x164   : > { %v643_v23 = vsel %vm343_vm10, %v2829_v50, %v641_v15  ;;  %v601_v22 = vpop.permute.xlu1 %600  ;;  %v1048_v50 = vsel %vm770_vm7, %v1043_v47, %v1047_v24  ;;  %v1176_v15 = vmul.f32 %v2987_v61, %v1175_v36 }
 0x165   : > { %v2926_v9 = vadd.f32 %v643_v23, %v571_v40  ;;  %v605_v39 = vsel %vm294_vm8, %v601_v22, %v2566_v30  ;;  %v1069_v30 = vmul.f32 %v1064_v60, %v2470_v16  ;;  %v2950_v60 = vmul.f32 %v2889_v12, %v1175_v36 }
 0x166   : > { %v2930_v11 = vadd.f32 %v605_v39, %v533_v49  ;;  %v1191_v40 = vrot.slane %v1177_v35, 3  ;;  %v1188_v51 = vrot.slane %v1176_v15, 3 }
 0x167   : > { %v1083_v49 = vrot.slane %v1069_v30, 2  ;;  %v1192_v34 = vrot.slane %v2950_v60, 3  ;;  %v1252_v30 = vmul.f32 %v2987_v61, %v1251_v57 }
 0x169   : > { %1160 = vrot.lane.b32.xlu0 %v1152_v4, %s2155_s14  ;;  %1093 = vrot.lane.b32.xlu2 %v1086_v42, %s2158_s27  ;;  %v1084_v19 = vsel %vm770_vm7, %v1078_v1, %v1083_v49  ;;  %v1193_v10 = vsel %vm1109_vm12, %v1191_v40, %v1192_v34  ;;  %v1226_v42 = vrot.slane %v1214_v59, 3  ;;  %v1265_v49 = vrot.slane %v1254_v28, 3 }
 0x16a   : > { %1055 = vrot.lane.b32.xlu1 %v1048_v50, %s2158_s27  ;;  %v1181_v50 = vmul.f32 %v2910_v58, %v1175_v36  ;;  %v3032_v40 = vstv %s1916_s17  ;;  %s1895_s17 = sshll.u32 %s2277_s4, 5 }
 0x16b   : > { %v677_v32 = vpop.permute.xlu0 %676  ;;  %v2944_v5 = vpop.permute.xlu2 %752 }
 0x16c   : > { %v637_v37 = vpop.permute.xlu1 %636 }
 0x16d   : > { %v642_v47 = vsel %vm343_vm10, %v635_v54, %v637_v37  ;;  %v1153_v54 = vrot.slane %v1139_v46, 3  ;;  %v1196_v37 = vrot.slane %v1181_v50, 3 }
 0x16e   : > { %v646_v41 = vadd.f32 %v642_v47, %v570_v3 }
 0x16f   : > { %v1155_v33 = vsel %vm1109_vm12, %v1153_v54, %v1154_v31  ;;  %v1234_v31 = vrot.slane %v1219_v7, 3  ;;  %v763_v54 = vstv %s1915_s24  ;;  %s3460_s24 = scalar_lea.vmem [#allocation8], %s1895_s17 }
 0x170   : > { %v765_v26 = vmul.f32 %v2979_v62, %v763_v54 }
 0x171   : > { %1166 = vrot.lane.b32.xlu0 %v1159_v44, %s2155_s14  ;;  %1164 = vrot.lane.b32.xlu2 %v1157_v13, %s2155_s14  ;;  %v1264_v44 = vrot.slane %v1252_v30, 3  ;;  %v3021_v13 = vmul.f32 %v2889_v12, %v1251_v57  ;;  %v766_v30 = vmul.f32 %v3028_v8, %v763_v54 }
 0x172   : > { %1091 = vrot.lane.b32.xlu1 %v1084_v19, %s2158_s27 }
 0x173   : > { %v713_v48 = vpop.permute.xlu0 %712  ;;  %v2961_v6 = vpop.permute.xlu2 %823  ;;  %v1266_v19 = vsel %vm1109_vm12, %v1264_v44, %v1265_v49  ;;  %v1268_v60 = vrot.slane %v3021_v13, 3  ;;  %v1327_v44 = vstv %s3054_s29 }
 0x174   : > { %v718_v16 = vsel %vm392_vm11, %v2901_v25, %v713_v48  ;;  %v673_v63 = vpop.permute.xlu1 %672  ;;  %v1217_v25 = vmul.f32 %v2889_v12, %v1213_v45  ;;  %v3038_v48 = vmul.f32 %v2979_v62, %v3032_v40 }
 0x175   : > { %v2965_v17 = vadd.f32 %v718_v16, %v646_v41  ;;  %v680_v1 = vsel %vm343_vm10, %v673_v63, %v2872_v20  ;;  %v2982_v20 = vmul.f32 %v2979_v62, %v1213_v45 }
 0x176   : > { %v2970_v3 = vadd.f32 %v680_v1, %v2883_v56  ;;  %v1229_v56 = vrot.slane %v1215_v43, 3  ;;  %v1230_v55 = vrot.slane %v1217_v25, 3  ;;  %v789_v25 = vrot.slane %v3038_v48, 2 }
 0x177   : > { %v1227_v23 = vrot.slane %v2982_v20, 3 }
 0x178   : > { %v1231_v14 = vsel %vm1109_vm12, %v1229_v56, %v1230_v55  ;;  %v1235_v46 = vsel %vm1109_vm12, %v1230_v55, %v1234_v31 }
 0x179   : > { %1202 = vrot.lane.b32.xlu0 %v1195_v53, %s2155_s14  ;;  %1200 = vrot.lane.b32.xlu2 %v1193_v10, %s2155_s14  ;;  %v1228_v4 = vsel %vm1109_vm12, %v1226_v42, %v1227_v23  ;;  %v782_v10 = vmul.f32 %v2987_v61, %v3032_v40  ;;  %v3052_v53 = vstv %s1931_s26  ;;  %s1953_s26 = sshll.u32 %s2197_s13, 5  ;;  %s1785_s13 = scalar_lea.sflag [#allocation5], %s2277_s4 }
 0x17a   : > { %1162 = vrot.lane.b32.xlu1 %v1155_v33, %s2155_s14  ;;  %v764_v33 = vmul.f32 %v2987_v61, %v763_v54  ;;  %v1291_v59 = vmul.f32 %v2844_v29, %v3052_v53  ;;  %v3062_v15 = vmul.f32 %v2889_v12, %v3052_v53  ;;  %v1292_v7 = vmul.f32 %v2979_v62, %v3052_v53 }
 0x17b   : > { %v749_v21 = vpop.permute.xlu0 %748  ;;  %v2990_v52 = vpop.permute.xlu2 %859 }
 0x17c   : > { %v679_v24 = vpop.permute.xlu1 %678  ;;  %v771_v42 = vrot.slane %v764_v33, 2  ;;  %v1306_v50 = vrot.slane %v3062_v15, 3 }
 0x17d   : > { %v681_v22 = vsel %vm343_vm10, %v677_v32, %v679_v24  ;;  %v1253_v24 = vmul.f32 %v2844_v29, %v1251_v57 }
 0x17e   : > { %v685_v39 = vadd.f32 %v681_v22, %v2930_v11  ;;  %v1190_v11 = vsel %vm1109_vm12, %v1188_v51, %v1189_v27  ;;  %v1305_v51 = vrot.slane %v1291_v59, 3 }
 0x180   : > { %v1307_v13 = vsel %vm1109_vm12, %v1305_v51, %v1306_v50 }
 0x181   : > { %1238 = vrot.lane.b32.xlu0 %v1231_v14, %s2156_s19  ;;  %1236 = vrot.lane.b32.xlu2 %v1228_v4, %s2156_s19  ;;  %v1294_v14 = vmul.f32 %v3028_v8, %v3052_v53 }
 0x182   : > { %1198 = vrot.lane.b32.xlu1 %v1190_v11, %s2155_s14 }
 0x183   : > { %v755_v0 = vpop.permute.xlu0 %754  ;;  %v3008_v32 = vpop.permute.xlu2 %865 }
 0x184   : > { %v757_v38 = vsel %vm392_vm11, %v2944_v5, %v755_v0  ;;  %v715_v47 = vpop.permute.xlu1 %714  ;;  %v1197_v5 = vsel %vm1109_vm12, %v1192_v34, %v1196_v37  ;;  %v1272_v34 = vrot.slane %v1257_v18, 3  ;;  %v1331_v18 = vmul.f32 %v2889_v12, %v1327_v44 }
 0x185   : > { %v3012_v36 = vadd.f32 %v757_v38, %v685_v39  ;;  %v719_v41 = vsel %vm392_vm11, %v715_v47, %v2922_v2  ;;  %v1256_v2 = vmul.f32 %v3028_v8, %v1251_v57  ;;  %v788_v39 = vrot.slane %v782_v10, 2 }
 0x186   : > { %v3017_v35 = vadd.f32 %v719_v41, %v2926_v9  ;;  %v1218_v9 = vmul.f32 %v3028_v8, %v1213_v45  ;;  %v1273_v55 = vsel %vm1109_vm12, %v1268_v60, %v1272_v34  ;;  %v1308_v38 = vrot.slane %v1294_v14, 3 }
 0x187   : > { %v1270_v27 = vrot.slane %v1256_v2, 3  ;;  %v790_v57 = vsel %vm770_vm7, %v788_v39, %v789_v25  ;;  %v1303_v41 = vrot.slane %v1292_v7, 3  ;;  %v1328_v34 = vmul.f32 %v2987_v61, %v1327_v44 }
 0x188   : > { %v1232_v45 = vrot.slane %v1218_v9, 3  ;;  %v1344_v9 = vrot.slane %v1331_v18, 3 }
 0x189   : > { %1274 = vrot.lane.b32.xlu0 %v1266_v19, %s2156_s19  ;;  %1242 = vrot.lane.b32.xlu2 %v1235_v46, %s2156_s19  ;;  %v1271_v22 = vsel %vm1109_vm12, %v1265_v49, %v1270_v27  ;;  %v1309_v19 = vsel %vm1109_vm12, %v1303_v41, %v1308_v38  ;;  %v784_v27 = vmul.f32 %v3028_v8, %v3032_v40 }
 0x18a   : > { %1204 = vrot.lane.b32.xlu1 %v1197_v5, %s2155_s14  ;;  %v774_v5 = vrot.slane %v766_v30, 2  ;;  %v1295_v40 = vmul.f32 %v2910_v58, %v3052_v53 }
 0x18b   : > { %v3042_v16 = vpop.permute.xlu0 %825  ;;  %v3044_v63 = vpop.permute.xlu2 %901  ;;  %v791_v39 = vrot.slane %v784_v27, 2 }
 0x18c   : > { %v751_v1 = vpop.permute.xlu1 %750  ;;  %v1310_v51 = vrot.slane %v1295_v40, 3 }
 0x18d   : > { %v756_v43 = vsel %vm392_vm11, %v749_v21, %v751_v1  ;;  %v772_v21 = vrot.slane %v765_v26, 2  ;;  %v1290_v1 = vmul.f32 %v2987_v61, %v3052_v53  ;;  %v792_v53 = vsel %vm770_vm7, %v789_v25, %v791_v39 }
 0x18e   : > { %v760_v56 = vadd.f32 %v756_v43, %v2970_v3  ;;  %v1233_v3 = vsel %vm1109_vm12, %v1227_v23, %v1232_v45  ;;  %v1267_v23 = vrot.slane %v1253_v24, 3  ;;  %v1340_v24 = vrot.slane %v1328_v34, 3 }
 0x18f   : > { %v773_v20 = vsel %vm770_vm7, %v771_v42, %v772_v21  ;;  %v1476_v39 = vstv %s1937_s6  ;;  %s1797_s6 = sshll.u32 %s3460_s24, 4  ;;  %s1798_s6 = int_to_ptr.vmem [resolvable:$true] %s1797_s6 }
 0x190   : > { %v795_v28 = vadd.f32 %v790_v57, %v760_v56  ;;  %v778_v37 = vadd.f32 %v773_v20, %v2965_v17  ;;  %v1269_v17 = vsel %vm1109_vm12, %v1267_v23, %v1268_v60  ;;  %v775_v60 = vsel %vm770_vm7, %v772_v21, %v774_v5 }
 0x191   : > { %1280 = vrot.lane.b32.xlu0 %v1273_v55, %s2156_s19  ;;  %1278 = vrot.lane.b32.xlu2 %v1271_v22, %s2156_s19  ;;  %v779_v45 = vadd.f32 %v775_v60, %v3017_v35  ;;  %v1365_v56 = vstv %s1933_s30  ;;  %v1333_v21 = vmul.f32 %v2910_v58, %v1327_v44  ;;  %v1302_v22 = vrot.slane %v1290_v1, 3 }
 0x192   : > { %1240 = vrot.lane.b32.xlu1 %v1233_v3, %s2156_s19  ;;  %v1368_v14 = vmul.f32 %v2979_v62, %v1365_v56  ;;  %v1366_v3 = vmul.f32 %v2987_v61, %v1365_v56  ;;  %v1369_v25 = vmul.f32 %v2889_v12, %v1365_v56  ;;  %v1371_v38 = vmul.f32 %v2910_v58, %v1365_v56 }
 0x193   : > { %v862_v4 = vpop.permute.xlu0 %861  ;;  %v3080_v11 = vpop.permute.xlu2 %937  ;;  %v1348_v42 = vrot.slane %v1333_v21, 3  ;;  %v1367_v34 = vmul.f32 %v2844_v29, %v1365_v56 }
 0x194   : > { %v867_v31 = vsel %vm245_vm9, %v2990_v52, %v862_v4  ;;  %v822_v0 = vpop.permute.xlu1 %821  ;;  %v1329_v52 = vmul.f32 %v2844_v29, %v1327_v44  ;;  %v1379_v23 = vrot.slane %v1368_v14, 3  ;;  %v1478_v14 = vmul.f32 %v2844_v29, %v1476_v39 }
 0x195   : > { %v3087_v47 = vadd.f32 %v867_v31, %v795_v28  ;;  %v829_v49 = vsel %vm245_vm9, %v822_v0, %v2961_v6  ;;  %v3102_v6 = vmul.f32 %v2979_v62, %v1327_v44  ;;  %v796_v28 = vadd.f32 %v792_v53, %v3012_v36 }
 0x196   : > { %v3092_v46 = vadd.f32 %v829_v49, %v778_v37  ;;  %v1343_v2 = vrot.slane %v1329_v52, 3  ;;  %v1378_v0 = vrot.slane %v1366_v3, 3  ;;  %v1349_v48 = vsel %vm1109_vm12, %v1344_v9, %v1348_v42 }
 0x197   : > { %v1341_v43 = vrot.slane %v3102_v6, 3  ;;  %v1311_v36 = vsel %vm1109_vm12, %v1306_v50, %v1310_v51  ;;  %v1370_v49 = vmul.f32 %v3028_v8, %v1365_v56  ;;  %v1381_v56 = vrot.slane %v1367_v34, 3 }
 0x198   : > { %v1345_v59 = vsel %vm1109_vm12, %v1343_v2, %v1344_v9  ;;  %v3191_v42 = vmul.f32 %v2979_v62, %v1476_v39 }
 0x199   : > { %1316 = vrot.lane.b32.xlu0 %v1309_v19, %s2157_s25  ;;  %1314 = vrot.lane.b32.xlu2 %v1307_v13, %s2157_s25  ;;  %v1342_v35 = vsel %vm1109_vm12, %v1340_v24, %v1341_v43  ;;  %v1386_v13 = vrot.slane %v1371_v38, 3  ;;  %v1403_v19 = vstv %s1934_s3  ;;  %v1482_v38 = vmul.f32 %v2910_v58, %v1476_v39  ;;  %s1796_s3 = scalar_lea.hbm %s3516_s2, %s1953_s26 }
 0x19a   : > { %1276 = vrot.lane.b32.xlu1 %v1269_v17, %s2156_s19  ;;  %v1384_v17 = vrot.slane %v1370_v49, 3  ;;  %v3163_v9 = vmul.f32 %v2889_v12, %v1403_v19  ;;  %v1408_v1 = vmul.f32 %v3028_v8, %v1403_v19 }
 0x19b   : > { %v898_v54 = vpop.permute.xlu0 %897  ;;  %v3108_v26 = vpop.permute.xlu2 %973 }
 0x19c   : > { %v828_v10 = vpop.permute.xlu1 %827  ;;  %v1385_v60 = vsel %vm1109_vm12, %v1379_v23, %v1384_v17  ;;  %v1422_v24 = vrot.slane %v1408_v1, 3 }
 0x19d   : > { %v830_v33 = vsel %vm245_vm9, %v3042_v16, %v828_v10  ;;  %v1304_v16 = vsel %vm1109_vm12, %v1302_v22, %v1303_v41  ;;  %v1382_v41 = vrot.slane %v1369_v25, 3 }
 0x19e   : > { %v834_v55 = vadd.f32 %v830_v33, %v779_v45  ;;  %v1420_v45 = vrot.slane %v3163_v9, 3 }
 0x19f   : > { %v1387_v2 = vsel %vm1109_vm12, %v1382_v41, %v1386_v13  ;;  %v1497_v13 = vrot.slane %v1482_v38, 4 }
 0x1a1   : > { %1352 = vrot.lane.b32.xlu0 %v1345_v59, %s2157_s25  ;;  %1350 = vrot.lane.b32.xlu2 %v1342_v35, %s2157_s25 }
 0x1a2   : > { %1312 = vrot.lane.b32.xlu1 %v1304_v16, %s2157_s25  ;;  %v1480_v16 = vmul.f32 %v2889_v12, %v1476_v39 }
 0x1a3   : > { %v904_v7 = vpop.permute.xlu0 %903  ;;  %v3130_v57 = vpop.permute.xlu2 %979 }
 0x1a4   : > { %v906_v4 = vsel %vm294_vm8, %v3044_v63, %v904_v7  ;;  %v864_v20 = vpop.permute.xlu1 %863  ;;  %v1380_v63 = vsel %vm1109_vm12, %v1378_v0, %v1379_v23  ;;  %v1477_v7 = vmul.f32 %v2987_v61, %v1476_v39 }
 0x1a5   : > { %v3138_v30 = vadd.f32 %v906_v4, %v834_v55  ;;  %v868_v31 = vsel %vm245_vm9, %v864_v20, %v3008_v32  ;;  %v1332_v32 = vmul.f32 %v3028_v8, %v1327_v44  ;;  %v1405_v44 = vmul.f32 %v2844_v29, %v1403_v19 }
 0x1a6   : > { %v3142_v37 = vadd.f32 %v868_v31, %v796_v28  ;;  %v1404_v4 = vmul.f32 %v2987_v61, %v1403_v19  ;;  %v1490_v20 = vrot.slane %v3191_v42, 4  ;;  %v1514_v31 = vstv %s1938_s7  ;;  %s1799_s7 = sshll.u32 %s1796_s3, 4  ;;  %s1800_s7 = int_to_ptr.hbm [resolvable:$true] %s1799_s7 }
 0x1a7   : > { %v1346_v5 = vrot.slane %v1332_v32, 3  ;;  %v1419_v27 = vrot.slane %v1405_v44, 3  ;;  %v1489_v25 = vrot.slane %v1477_v7, 4  ;;  %v1517_v32 = vmul.f32 %v2979_v62, %v1514_v31 }
 0x1a8   : > { %v1520_v1 = vmul.f32 %v2910_v58, %v1514_v31 }
 0x1a9   : > { %1388 = vrot.lane.b32.xlu0 %v1380_v63, %s2158_s27  ;;  %1356 = vrot.lane.b32.xlu2 %v1349_v48, %s2157_s25  ;;  %v1421_v35 = vsel %vm1109_vm12, %v1419_v27, %v1420_v45  ;;  %v1409_v63 = vmul.f32 %v2910_v58, %v1403_v19  ;;  %v1491_v49 = vsel %vm1448_vm13, %v1489_v25, %v1490_v20  ;;  %v3260_v25 = vstv %s1940_s23 }
 0x1aa   : > { %1318 = vrot.lane.b32.xlu1 %v1311_v36, %s2157_s25  ;;  %v1416_v36 = vrot.slane %v1404_v4, 3  ;;  %v1535_v27 = vrot.slane %v1520_v1, 4  ;;  %v1628_v1 = vstv %s1941_s5 }
 0x1ab   : > { %v940_v52 = vpop.permute.xlu0 %939  ;;  %v3156_v18 = vpop.permute.xlu2 %1015  ;;  %v1424_v17 = vrot.slane %v1409_v63, 3  ;;  %v1594_v63 = vmul.f32 %v2889_v12, %v3260_v25 }
 0x1ac   : > { %v900_v15 = vpop.permute.xlu1 %899 }
 0x1ad   : > { %v905_v50 = vsel %vm294_vm8, %v898_v54, %v900_v15  ;;  %v1347_v54 = vsel %vm1109_vm12, %v1341_v43, %v1346_v5 }
 0x1ae   : > { %v909_v6 = vadd.f32 %v905_v50, %v3092_v46  ;;  %v1406_v46 = vmul.f32 %v2979_v62, %v1403_v19  ;;  %v1528_v19 = vrot.slane %v1517_v32, 4  ;;  %v3276_v32 = vmul.f32 %v2979_v62, %v3260_v25 }
 0x1b0   : > { %v1417_v22 = vrot.slane %v1406_v46, 3  ;;  %v1519_v46 = vmul.f32 %v3028_v8, %v1514_v31 }
 0x1b1   : > { %1394 = vrot.lane.b32.xlu0 %v1387_v2, %s2158_s27  ;;  %1392 = vrot.lane.b32.xlu2 %v1385_v60, %s2158_s27  ;;  %v1518_v60 = vmul.f32 %v2889_v12, %v1514_v31 }
 0x1b2   : > { %1354 = vrot.lane.b32.xlu1 %v1347_v54, %s2157_s25  ;;  %v1423_v3 = vsel %vm1109_vm12, %v1417_v22, %v1422_v24 }
 0x1b3   : > { %v976_v10 = vpop.permute.xlu0 %975  ;;  %v3174_v33 = vpop.permute.xlu2 %1051 }
 0x1b4   : > { %v981_v55 = vsel %vm343_vm10, %v3108_v26, %v976_v10  ;;  %v936_v59 = vpop.permute.xlu1 %935  ;;  %v1383_v26 = vsel %vm1109_vm12, %v1381_v56, %v1382_v41  ;;  %v1418_v41 = vsel %vm1109_vm12, %v1416_v36, %v1417_v22 }
 0x1b5   : > { %v3178_v21 = vadd.f32 %v981_v55, %v909_v6  ;;  %v943_v43 = vsel %vm294_vm8, %v936_v59, %v3080_v11  ;;  %v1492_v11 = vrot.slane %v1478_v14, 4  ;;  %v1533_v59 = vrot.slane %v1519_v46, 4 }
 0x1b6   : > { %v3183_v40 = vadd.f32 %v943_v43, %v3087_v47  ;;  %v1493_v47 = vrot.slane %v1480_v16, 4  ;;  %v1552_v43 = vstv %s1939_s8  ;;  %v1516_v16 = vmul.f32 %v2844_v29, %v1514_v31  ;;  %s2092_s8 = sshra.s32 %s1800_s7, 4  ;;  %s2093_s8 = int_to_ptr.hbm [resolvable:$true] %s2092_s8 }
 0x1b7   : > { %v3241_v14 = vmul.f32 %v2889_v12, %v1552_v43  ;;  %s2094_s23 = scalar_lea.hbm %s2093_s8, 32  ;;  %p2099_p0 = scmp.lt.s32.totalorder %s2093_s8, %s3516_s2 }
 0x1b8   : > { %v1494_v48 = vsel %vm1448_vm13, %v1492_v11, %v1493_v47  ;;  %v1498_v34 = vsel %vm1448_vm13, %v1493_v47, %v1497_v13  ;;  %v1530_v4 = vrot.slane %v1516_v16, 4  ;;  %v1607_v13 = vrot.slane %v1594_v63, 4  ;;  %p2095_p4 = scmp.ne.s32.totalorder %s2093_s8, %s2094_s23 }
 0x1b9   : > { %1430 = vrot.lane.b32.xlu0 %v1423_v3, %s2158_s27  ;;  %1428 = vrot.lane.b32.xlu2 %v1421_v35, %s2158_s27  ;;  %v1557_v3 = vmul.f32 %v3028_v8, %v1552_v43  ;;  %v1569_v47 = vrot.slane %v3241_v14, 4 }
 0x1ba   : > { %1390 = vrot.lane.b32.xlu1 %v1383_v26, %s2158_s27  ;;  %v1534_v26 = vsel %vm1448_vm13, %v1528_v19, %v1533_v59  ;;  %p2096_p6 = pnand %p2095_p4, %p2228_p11 }
 0x1bb   : > { %v1012_v53 = vpop.permute.xlu0 %1011  ;;  %v3197_v51 = vpop.permute.xlu2 %1087 }
 0x1bc   : > { %v942_v28 = vpop.permute.xlu1 %941  ;;  %p2097_p13 = pneg %p2096_p6 }
 0x1bd   : > { %v944_v23 = vsel %vm294_vm8, %v940_v52, %v942_v28 }
 0x1be   : > { %v948_v0 = vadd.f32 %v944_v23, %v3142_v37  ;;  %v1515_v37 = vmul.f32 %v2987_v61, %v1514_v31  ;;  %v1571_v31 = vrot.slane %v1557_v3, 4 }
 0x1c0   : > { %v1527_v44 = vrot.slane %v1515_v37, 4 }
 0x1c1   : > { %1501 = vrot.lane.b32.xlu0 %v1494_v48, %s2155_s14  ;;  %1499 = vrot.lane.b32.xlu2 %v1491_v49, %s2155_s14 }
 0x1c2   : > { %1426 = vrot.lane.b32.xlu1 %v1418_v41, %s2158_s27  ;;  %v1529_v54 = vsel %vm1448_vm13, %v1527_v44, %v1528_v19  ;;  %v1102_v41 = vstv %s1925_s28 }
 0x1c3   : > { %v1018_v52 = vpop.permute.xlu0 %1017  ;;  %v3213_v15 = vpop.permute.xlu2 %1093  ;;  %v1104_v44 = vmul.f32 %v2979_v62, %v1102_v41 }
 0x1c4   : > { %v1020_v50 = vsel %vm343_vm10, %v3156_v18, %v1018_v52  ;;  %v978_v5 = vpop.permute.xlu1 %977  ;;  %v1425_v18 = vsel %vm1109_vm12, %v1420_v45, %v1424_v17  ;;  %v1105_v52 = vmul.f32 %v3028_v8, %v1102_v41 }
 0x1c5   : > { %v3217_v6 = vadd.f32 %v1020_v50, %v948_v0  ;;  %v982_v2 = vsel %vm343_vm10, %v978_v5, %v3130_v57  ;;  %v1481_v57 = vmul.f32 %v3028_v8, %v1476_v39  ;;  %v1554_v39 = vmul.f32 %v2844_v29, %v1552_v43 }
 0x1c6   : > { %v3222_v9 = vadd.f32 %v982_v2, %v3138_v30  ;;  %v1531_v30 = vrot.slane %v1518_v60, 4  ;;  %v1553_v5 = vmul.f32 %v2987_v61, %v1552_v43  ;;  %v1604_v2 = vrot.slane %v3276_v32, 4 }
 0x1c7   : > { %v1495_v24 = vrot.slane %v1481_v57, 4  ;;  %v1568_v11 = vrot.slane %v1554_v39, 4  ;;  %v1113_v46 = vrot.slane %v1105_v52, 3  ;;  %v1596_v57 = vmul.f32 %v2910_v58, %v3260_v25 }
 0x1c8   : > { %v1536_v35 = vsel %vm1448_vm13, %v1531_v30, %v1535_v27  ;;  %v1532_v49 = vsel %vm1448_vm13, %v1530_v4, %v1531_v30  ;;  %v1565_v30 = vrot.slane %v1553_v5, 4  ;;  %v1558_v27 = vmul.f32 %v2910_v58, %v1552_v43 }
 0x1c9   : > { %1537 = vrot.lane.b32.xlu0 %v1529_v54, %s2155_s14  ;;  %1505 = vrot.lane.b32.xlu2 %v1498_v34, %s2155_s14  ;;  %v1496_v42 = vsel %vm1448_vm13, %v1490_v20, %v1495_v24  ;;  %v1570_v36 = vsel %vm1448_vm13, %v1568_v11, %v1569_v47  ;;  %v1111_v59 = vrot.slane %v1104_v44, 3  ;;  %v1103_v4 = vmul.f32 %v2987_v61, %v1102_v41 }
 0x1ca   : > { %1432 = vrot.lane.b32.xlu1 %v1425_v18, %s2158_s27  ;;  %v1573_v16 = vrot.slane %v1558_v27, 4 }
 0x1cb   : > { %v1054_v10 = vpop.permute.xlu0 %1053  ;;  %v3234_v56 = vpop.permute.xlu2 %1164  ;;  %v1114_v24 = vsel %vm1109_vm12, %v1111_v59, %v1113_v46  ;;  %v1630_v46 = vmul.f32 %v2844_v29, %v1628_v1 }
 0x1cc   : > { %v1014_v55 = vpop.permute.xlu1 %1013 }
 0x1cd   : > { %v1019_v45 = vsel %vm343_vm10, %v1012_v53, %v1014_v55 }
 0x1ce   : > { %v1023_v22 = vadd.f32 %v1019_v45, %v3183_v40  ;;  %v1555_v40 = vmul.f32 %v2979_v62, %v1552_v43  ;;  %v1629_v45 = vmul.f32 %v2987_v61, %v1628_v1  ;;  %v1611_v43 = vrot.slane %v1596_v57, 4 }
 0x1d0   : > { %v1566_v48 = vrot.slane %v1555_v40, 4 }
 0x1d1   : > { %1543 = vrot.lane.b32.xlu0 %v1536_v35, %s2155_s14  ;;  %1541 = vrot.lane.b32.xlu2 %v1534_v26, %s2155_s14 }
 0x1d2   : > { %1503 = vrot.lane.b32.xlu1 %v1496_v42, %s2155_s14 }
 0x1d3   : > { %v1090_v7 = vpop.permute.xlu0 %1089  ;;  %v3252_v53 = vpop.permute.xlu2 %1200 }
 0x1d4   : > { %v1095_v28 = vsel %vm392_vm11, %v3197_v51, %v1090_v7  ;;  %v1050_v23 = vpop.permute.xlu1 %1049  ;;  %v1592_v51 = vmul.f32 %v2844_v29, %v3260_v25  ;;  %v1641_v7 = vrot.slane %v1629_v45, 4 }
 0x1d5   : > { %v3256_v0 = vadd.f32 %v1095_v28, %v1023_v22  ;;  %v1057_v20 = vsel %vm392_vm11, %v1050_v23, %v3174_v33  ;;  %v1572_v33 = vsel %vm1448_vm13, %v1566_v48, %v1571_v31  ;;  %v1612_v23 = vsel %vm1448_vm13, %v1607_v13, %v1611_v43 }
 0x1d6   : > { %v3263_v38 = vadd.f32 %v1057_v20, %v3178_v21  ;;  %v1591_v21 = vmul.f32 %v2987_v61, %v3260_v25  ;;  %v1606_v37 = vrot.slane %v1592_v51, 4  ;;  %v1632_v31 = vmul.f32 %v2889_v12, %v1628_v1 }
 0x1d7   : > { %v1574_v20 = vsel %vm1448_vm13, %v1569_v47, %v1573_v16 }
 0x1d8   : > { %v1603_v60 = vrot.slane %v1591_v21, 4  ;;  %v1608_v54 = vsel %vm1448_vm13, %v1606_v37, %v1607_v13  ;;  %v1645_v51 = vrot.slane %v1632_v31, 4 }
 0x1d9   : > { %1579 = vrot.lane.b32.xlu0 %v1572_v33, %s2156_s19  ;;  %1577 = vrot.lane.b32.xlu2 %v1570_v36, %s2156_s19  ;;  %v1595_v36 = vmul.f32 %v3028_v8, %v3260_v25 }
 0x1da   : > { %1539 = vrot.lane.b32.xlu1 %v1532_v49, %s2155_s14  ;;  %v1605_v55 = vsel %vm1448_vm13, %v1603_v60, %v1604_v2  ;;  %s1926_s14 = sld [smem:[#allocation3 + $0x28]] }
 0x1db   : > { %v1161_v17 = vpop.permute.xlu0 %1160  ;;  %v3284_v50 = vpop.permute.xlu2 %1236  ;;  %v1609_v25 = vrot.slane %v1595_v36, 4 }
 0x1dc   : > { %v1056_v19 = vpop.permute.xlu1 %1055 }
 0x1dd   : > { %v1058_v34 = vsel %vm392_vm11, %v1054_v10, %v1056_v19  ;;  %v1631_v10 = vmul.f32 %v2979_v62, %v1628_v1  ;;  %v1666_v19 = vstv %s1942_s20  ;;  %v1610_v57 = vsel %vm1448_vm13, %v1604_v2, %v1609_v25 }
 0x1de   : > { %v1062_v18 = vadd.f32 %v1058_v34, %v3222_v9  ;;  %v1567_v9 = vsel %vm1448_vm13, %v1565_v30, %v1566_v48  ;;  %v1668_v60 = vmul.f32 %v2844_v29, %v1666_v19  ;;  %v1669_v27 = vmul.f32 %v2979_v62, %v1666_v19 }
 0x1df   : > { %v1642_v42 = vrot.slane %v1631_v10, 4  ;;  %v1672_v25 = vmul.f32 %v2910_v58, %v1666_v19 }
 0x1e0   : > { %v1118_v35 = vadd.f32 %v1114_v24, %v1062_v18  ;;  %v1120_v49 = vstv %s1926_s14  ;;  %v3342_v18 = vmul.f32 %v2889_v12, %v1666_v19  ;;  %v1680_v16 = vrot.slane %v1669_v27, 4  ;;  %s2098_s14 = scalar_lea.hbm %s3516_s2, 64 }
 0x1e1   : > { %1615 = vrot.lane.b32.xlu0 %v1608_v54, %s2156_s19  ;;  %1613 = vrot.lane.b32.xlu2 %v1605_v55, %s2156_s19  ;;  %v1643_v48 = vsel %vm1448_vm13, %v1641_v7, %v1642_v42  ;;  %v1122_v21 = vmul.f32 %v2979_v62, %v1120_v49  ;;  %v1121_v5 = vmul.f32 %v2987_v61, %v1120_v49  ;;  %v1682_v55 = vrot.slane %v1668_v60, 4  ;;  %p2100_p3 = scmp.lt.s32.totalorder %s2098_s14, %s2094_s23 }
 0x1e2   : > { %1575 = vrot.lane.b32.xlu1 %v1567_v9, %s2156_s19  ;;  %v1683_v29 = vrot.slane %v3342_v18, 4  ;;  %v1644_v9 = vrot.slane %v1630_v46, 4  ;;  %v1123_v45 = vmul.f32 %v3028_v8, %v1120_v49  ;;  %v1687_v46 = vrot.slane %v1672_v25, 4 }
 0x1e3   : > { %v1167_v22 = vpop.permute.xlu0 %1166  ;;  %v3305_v39 = vpop.permute.xlu2 %1242  ;;  %v1128_v54 = vrot.slane %v1122_v21, 3  ;;  %v1127_v30 = vrot.slane %v1121_v5, 3  ;;  %p2101_p5 = por %p2100_p3, %p2099_p0 }
 0x1e4   : > { %v1169_v26 = vsel %vm245_vm9, %v3234_v56, %v1167_v22  ;;  %v1092_v3 = vpop.permute.xlu1 %1091  ;;  %v1634_v56 = vmul.f32 %v2910_v58, %v1628_v1  ;;  %v1646_v7 = vsel %vm1448_vm13, %v1644_v9, %v1645_v51 }
 0x1e5   : > { %v3309_v40 = vadd.f32 %v1169_v26, %v1118_v35  ;;  %v1096_v11 = vsel %vm392_vm11, %v1092_v3, %v3213_v15  ;;  %v1633_v15 = vmul.f32 %v3028_v8, %v1628_v1  ;;  %v1129_v10 = vsel %vm1109_vm12, %v1127_v30, %v1128_v54  ;;  %p2102_p8 = pnand %p2101_p5, %p2097_p13 }
 0x1e6   : > { %v3315_v28 = vadd.f32 %v1096_v11, %v3217_v6  ;;  %v1110_v6 = vrot.slane %v1103_v4, 3  ;;  %v1649_v63 = vrot.slane %v1634_v56, 4  ;;  %v1134_v24 = vadd.f32 %v1129_v10, %v3256_v0  ;;  %v3371_v11 = vld [vmem:[#allocation2 + $0x8] sm:$0xff] }
 0x1e7   : > { %v1647_v13 = vrot.slane %v1633_v15, 4  ;;  %v1704_v26 = vstv %s1943_s16  ;;  %v1130_v4 = vrot.slane %v1123_v45, 3  ;;  %v2029_v10 = vld [vmem:[#allocation2 + $0x28] sm:$0xf]  ;;  %v1688_v45 = vsel %vm1448_vm13, %v1683_v29, %v1687_v46 }
 0x1e8   : > { %v1112_v33 = vsel %vm1109_vm12, %v1110_v6, %v1111_v59  ;;  %v1650_v34 = vsel %vm1448_vm13, %v1645_v51, %v1649_v63  ;;  %v1708_v0 = vmul.f32 %v2889_v12, %v1704_v26  ;;  %v1705_v31 = vmul.f32 %v2987_v61, %v1704_v26 }
 0x1e9   : > { %1651 = vrot.lane.b32.xlu0 %v1643_v48, %s2157_s25  ;;  %1619 = vrot.lane.b32.xlu2 %v1612_v23, %s2156_s19  ;;  %v1117_v37 = vadd.f32 %v1112_v33, %v3263_v38  ;;  %v1648_v38 = vsel %vm1448_vm13, %v1642_v42, %v1647_v13  ;;  %v1684_v42 = vsel %vm1448_vm13, %v1682_v55, %v1683_v29  ;;  %v2028_v55 = vld [vmem:[#allocation2 + $0x18] sm:$0xff] }
 0x1ea   : > { %1581 = vrot.lane.b32.xlu1 %v1574_v20, %s2156_s19  ;;  %v3378_v23 = vmul.f32 %v2979_v62, %v1704_v26  ;;  %v1721_v20 = vrot.slane %v1708_v0, 4  ;;  %v1131_v15 = vsel %vm1109_vm12, %v1128_v54, %v1130_v4  ;;  %v1667_v6 = vmul.f32 %v2987_v61, %v1666_v19 }
 0x1eb   : > { %v3330_v14 = vpop.permute.xlu0 %1202  ;;  %v3332_v47 = vpop.permute.xlu2 %1278  ;;  %v1135_v36 = vadd.f32 %v1131_v15, %v3315_v28  ;;  %v1717_v33 = vrot.slane %v1705_v31, 4  ;;  %v1710_v13 = vmul.f32 %v2910_v58, %v1704_v26 }
 0x1ec   : > { %v1163_v41 = vpop.permute.xlu1 %1162  ;;  %v1718_v63 = vrot.slane %v3378_v23, 4 }
 0x1ed   : > { %v1168_v52 = vsel %vm245_vm9, %v1161_v17, %v1163_v41  ;;  %v1671_v17 = vmul.f32 %v3028_v8, %v1666_v19 }
 0x1ee   : > { %v1172_v44 = vadd.f32 %v1168_v52, %v1117_v37  ;;  %v1679_v52 = vrot.slane %v1667_v6, 4  ;;  %v1719_v5 = vsel %vm1448_vm13, %v1717_v33, %v1718_v63 }
 0x1ef   : > { %v1685_v43 = vrot.slane %v1671_v17, 4 }
 0x1f1   : > { %1657 = vrot.lane.b32.xlu0 %v1650_v34, %s2157_s25  ;;  %1655 = vrot.lane.b32.xlu2 %v1648_v38, %s2157_s25  ;;  %v1725_v34 = vrot.slane %v1710_v13, 4 }
 0x1f2   : > { %1617 = vrot.lane.b32.xlu1 %v1610_v57, %s2156_s19  ;;  %s1944_s19 = sld [smem:[#allocation3 + $0x31]] }
 0x1f3   : > { %v1239_v1 = vpop.permute.xlu0 %1238  ;;  %v3355_v59 = vpop.permute.xlu2 %1314 }
 0x1f4   : > { %v1244_v32 = vsel %vm294_vm8, %v3284_v50, %v1239_v1  ;;  %v1199_v2 = vpop.permute.xlu1 %1198  ;;  %v1706_v50 = vmul.f32 %v3371_v11, %v1704_v26 }
 0x1f5   : > { %v3362_v22 = vadd.f32 %v1244_v32, %v1172_v44  ;;  %v1206_v35 = vsel %vm245_vm9, %v1199_v2, %v3252_v53  ;;  %v1686_v53 = vsel %vm1448_vm13, %v1680_v16, %v1685_v43 }
 0x1f6   : > { %v3366_v3 = vadd.f32 %v1206_v35, %v1134_v24  ;;  %v1720_v56 = vrot.slane %v1706_v50, 4 }
 0x1f8   : > { %v1722_v41 = vsel %vm1448_vm13, %v1720_v56, %v1721_v20  ;;  %v1742_v37 = vstv %s1944_s19 }
 0x1f9   : > { %1693 = vrot.lane.b32.xlu0 %v1686_v53, %s2157_s25  ;;  %1691 = vrot.lane.b32.xlu2 %v1684_v42, %s2157_s25  ;;  %v1745_v28 = vmul.f32 %v2979_v62, %v1742_v37  ;;  %v1743_v44 = vmul.f32 %v2987_v61, %v1742_v37  ;;  %v1726_v61 = vsel %vm1448_vm13, %v1721_v20, %v1725_v34 }
 0x1fa   : > { %1653 = vrot.lane.b32.xlu1 %v1646_v7, %s2157_s25  ;;  %v1746_v1 = vmul.f32 %v2028_v55, %v1742_v37  ;;  %v1748_v9 = vmul.f32 %v2029_v10, %v1742_v37  ;;  %v1747_v32 = vmul.f32 %v3028_v8, %v1742_v37  ;;  %v1744_v0 = vmul.f32 %v3371_v11, %v1742_v37  ;;  %v2030_v55 = vld [vmem:[#allocation2 + $0x10] sm:$0xff] }
 0x1fb   : > { %v1275_v12 = vpop.permute.xlu0 %1274  ;;  %v3384_v48 = vpop.permute.xlu2 %1350  ;;  %v1756_v38 = vrot.slane %v1745_v28, 4  ;;  %v1755_v30 = vrot.slane %v1743_v44, 4 }
 0x1fc   : > { %v1205_v51 = vpop.permute.xlu1 %1204  ;;  %v1763_v2 = vrot.slane %v1748_v9, 4  ;;  %v1761_v18 = vrot.slane %v1747_v32, 4  ;;  %v1758_v53 = vrot.slane %v1744_v0, 4 }
 0x1fd   : > { %v1207_v49 = vsel %vm245_vm9, %v3330_v14, %v1205_v51  ;;  %v1681_v14 = vsel %vm1448_vm13, %v1679_v52, %v1680_v16 }
 0x1fe   : > { %v1211_v21 = vadd.f32 %v1207_v49, %v1135_v36  ;;  %v1762_v7 = vsel %vm1448_vm13, %v1756_v38, %v1761_v18 }
 0x201   : > { %1729 = vrot.lane.b32.xlu0 %v1722_v41, %s2158_s27  ;;  %1727 = vrot.lane.b32.xlu2 %v1719_v5, %s2158_s27 }
 0x202   : > { %1689 = vrot.lane.b32.xlu1 %v1681_v14, %s2157_s25 }
 0x203   : > { %v1281_v60 = vpop.permute.xlu0 %1280  ;;  %v1357_v54 = vpop.permute.xlu2 %1356 }
 0x204   : > { %v1283_v58 = vsel %vm294_vm8, %v3332_v47, %v1281_v60  ;;  %v1241_v19 = vpop.permute.xlu1 %1240  ;;  %v1757_v47 = vsel %vm1448_vm13, %v1755_v30, %v1756_v38 }
 0x205   : > { %v1287_v17 = vadd.f32 %v1283_v58, %v1211_v21  ;;  %v1245_v57 = vsel %vm294_vm8, %v1241_v19, %v3305_v39  ;;  %v1709_v39 = vmul.f32 %v3028_v8, %v1704_v26 }
 0x206   : > { %v1249_v27 = vadd.f32 %v1245_v57, %v3309_v40  ;;  %v1759_v40 = vrot.slane %v1746_v1, 4 }
 0x207   : > { %v1723_v16 = vrot.slane %v1709_v39, 4 }
 0x208   : > { %v1764_v50 = vsel %vm1448_vm13, %v1759_v40, %v1763_v2 }
 0x209   : > { %1765 = vrot.lane.b32.xlu0 %v1757_v47, %s2158_s27  ;;  %1733 = vrot.lane.b32.xlu2 %v1726_v61, %s2158_s27  ;;  %v1724_v26 = vsel %vm1448_vm13, %v1718_v63, %v1723_v16 }
 0x20a   : > { %1695 = vrot.lane.b32.xlu1 %v1688_v45, %s2157_s25  ;;  %s1935_s25 = sld [smem:[#allocation3 + $0x14]] }
 0x20b   : > { %v1317_v24 = vpop.permute.xlu0 %1316  ;;  %v1393_v43 = vpop.permute.xlu2 %1392 }
 0x20c   : > { %v1277_v35 = vpop.permute.xlu1 %1276 }
 0x20d   : > { %v1282_v29 = vsel %vm294_vm8, %v1275_v12, %v1277_v35  ;;  %v1760_v12 = vsel %vm1448_vm13, %v1758_v53, %v1759_v40 }
 0x20e   : > { %v1286_v42 = vadd.f32 %v1282_v29, %v3366_v3 }
 0x210   : > { %v1441_v60 = vstv %s1935_s25 }
 0x211   : > { %1771 = vrot.lane.b32.xlu0 %v1764_v50, %s2158_s27  ;;  %1769 = vrot.lane.b32.xlu2 %v1762_v7, %s2158_s27  ;;  %v1443_v19 = vmul.f32 %v2979_v62, %v1441_v60 }
 0x212   : > { %1731 = vrot.lane.b32.xlu1 %v1724_v26, %s2158_s27 }
 0x213   : > { %v1353_v4 = vpop.permute.xlu0 %1352  ;;  %v1429_v56 = vpop.permute.xlu2 %1428 }
 0x214   : > { %v1358_v23 = vsel %vm343_vm10, %v3384_v48, %v1353_v4  ;;  %v1313_v3 = vpop.permute.xlu1 %1312 }
 0x215   : > { %v1362_v31 = vadd.f32 %v1358_v23, %v1286_v42  ;;  %v1320_v11 = vsel %vm343_vm10, %v1313_v3, %v3355_v59 }
 0x216   : > { %v1324_v20 = vadd.f32 %v1320_v11, %v3362_v22 }
 0x21a   : > { %1767 = vrot.lane.b32.xlu1 %v1760_v12, %s2158_s27  ;;  %s1936_s27 = sld [smem:[#allocation3 + $0x2d]] }
 0x21b   : > { %v1389_v15 = vpop.permute.xlu0 %1388  ;;  %v3434_v63 = vpop.permute.xlu2 %1499 }
 0x21c   : > { %v1319_v6 = vpop.permute.xlu1 %1318 }
 0x21d   : > { %v1321_v36 = vsel %vm343_vm10, %v1317_v24, %v1319_v6 }
 0x21e   : > { %v1325_v51 = vadd.f32 %v1321_v36, %v1249_v27  ;;  %v1450_v27 = vrot.slane %v1443_v19, 4 }
 0x220   : > { %v1459_v61 = vstv %s1936_s27 }
 0x221   : > { %v1461_v1 = vmul.f32 %v2030_v55, %v1459_v61 }
 0x223   : > { %v1395_v48 = vpop.permute.xlu0 %1394  ;;  %v1506_v22 = vpop.permute.xlu2 %1505  ;;  %v1467_v2 = vrot.slane %v1461_v1, 4 }
 0x224   : > { %v1397_v49 = vsel %vm392_vm11, %v1393_v43, %v1395_v48  ;;  %v1355_v33 = vpop.permute.xlu1 %1354 }
 0x225   : > { %v1401_v21 = vadd.f32 %v1397_v49, %v1325_v51  ;;  %v1359_v59 = vsel %vm343_vm10, %v1355_v33, %v1357_v54  ;;  %v1444_v54 = vmul.f32 %v3028_v8, %v1441_v60  ;;  %v2031_v8 = vld [vmem:[#allocation2] sm:$0xff] }
 0x226   : > { %v1363_v41 = vadd.f32 %v1359_v59, %v1287_v17  ;;  %v1460_v39 = vmul.f32 %v2031_v8, %v1459_v61 }
 0x227   : > { %v1452_v30 = vrot.slane %v1444_v54, 4 }
 0x228   : > { %v1466_v24 = vrot.slane %v1460_v39, 4 }
 0x229   : > { %v1453_v9 = vsel %vm1448_vm13, %v1450_v27, %v1452_v30 }
 0x22a   : > { %v1457_v45 = vadd.f32 %v1453_v9, %v1401_v21  ;;  %v1468_v35 = vsel %vm1448_vm13, %v1466_v24, %v1467_v2 }
 0x22b   : > { %v1431_v37 = vpop.permute.xlu0 %1430  ;;  %v3439_v5 = vpop.permute.xlu2 %1541 }
 0x22c   : > { %v1391_v13 = vpop.permute.xlu1 %1390 }
 0x22d   : > { %v1396_v52 = vsel %vm392_vm11, %v1389_v15, %v1391_v13 }
 0x22e   : > { %v1400_v25 = vadd.f32 %v1396_v52, %v1324_v20 }
 0x233   : > { %v1502_v28 = vpop.permute.xlu0 %1501  ;;  %v1578_v38 = vpop.permute.xlu2 %1577 }
 0x234   : > { %v1427_v14 = vpop.permute.xlu1 %1426  ;;  %v1507_v15 = vsel %vm245_vm9, %v3434_v63, %v1502_v28 }
 0x235   : > { %v1434_v44 = vsel %vm392_vm11, %v1427_v14, %v1429_v56  ;;  %v1442_v56 = vmul.f32 %v2031_v8, %v1441_v60 }
 0x236   : > { %v1438_v34 = vadd.f32 %v1434_v44, %v1362_v31 }
 0x237   : > { %v1449_v11 = vrot.slane %v1442_v56, 4 }
 0x238   : > { %v1473_v29 = vadd.f32 %v1468_v35, %v1438_v34 }
 0x239   : > { %v1451_v12 = vsel %vm1448_vm13, %v1449_v11, %v1450_v27 }
 0x23a   : > { %v1456_v36 = vadd.f32 %v1451_v12, %v1400_v25 }
 0x23b   : > { %v1538_v46 = vpop.permute.xlu0 %1537  ;;  %v3447_v62 = vpop.permute.xlu2 %1613 }
 0x23c   : > { %v1433_v58 = vpop.permute.xlu1 %1432  ;;  %v1511_v48 = vadd.f32 %v1507_v15, %v1456_v36 }
 0x23d   : > { %v1435_v17 = vsel %vm392_vm11, %v1431_v37, %v1433_v58 }
 0x23e   : > { %v1439_v57 = vadd.f32 %v1435_v17, %v1363_v41 }
 0x243   : > { %v1544_v10 = vpop.permute.xlu0 %1543  ;;  %v1620_v50 = vpop.permute.xlu2 %1619 }
 0x244   : > { %v1504_v47 = vpop.permute.xlu1 %1503  ;;  %v1546_v34 = vsel %vm245_vm9, %v3439_v5, %v1544_v10 }
 0x245   : > { %v1508_v32 = vsel %vm245_vm9, %v1504_v47, %v1506_v22  ;;  %v2032_v22 = vld [vmem:[#allocation2 + $0x20] sm:$0xf] }
 0x246   : > { %v1512_v40 = vadd.f32 %v1508_v32, %v1457_v45  ;;  %v1462_v37 = vmul.f32 %v2032_v22, %v1459_v61 }
 0x248   : > { %v1469_v63 = vrot.slane %v1462_v37, 4 }
 0x24a   : > { %v1470_v44 = vsel %vm1448_vm13, %v1467_v2, %v1469_v63 }
 0x24b   : > { %v1580_v43 = vpop.permute.xlu0 %1579  ;;  %v1656_v26 = vpop.permute.xlu2 %1655 }
 0x24c   : > { %v1540_v18 = vpop.permute.xlu1 %1539 }
 0x24d   : > { %v1545_v16 = vsel %vm245_vm9, %v1538_v46, %v1540_v18  ;;  %v1474_v46 = vadd.f32 %v1470_v44, %v1439_v57 }
 0x24e   : > { %v3451_v42 = vadd.f32 %v1545_v16, %v1473_v29 }
 0x24f   : > { %v1550_v58 = vadd.f32 %v1546_v34, %v1474_v46 }
 0x253   : > { %v1616_v0 = vpop.permute.xlu0 %1615  ;;  %v1692_v31 = vpop.permute.xlu2 %1691 }
 0x254   : > { %v1576_v7 = vpop.permute.xlu1 %1575  ;;  %v1621_v32 = vsel %vm294_vm8, %v3447_v62, %v1616_v0 }
 0x255   : > { %v1583_v51 = vsel %vm294_vm8, %v1576_v7, %v1578_v38  ;;  %v1625_v39 = vadd.f32 %v1621_v32, %v3451_v42 }
 0x256   : > { %v1587_v21 = vadd.f32 %v1583_v51, %v1511_v48 }
 0x25b   : > { %v1652_v4 = vpop.permute.xlu0 %1651  ;;  %v1728_v49 = vpop.permute.xlu2 %1727 }
 0x25c   : > { %v1582_v53 = vpop.permute.xlu1 %1581 }
 0x25d   : > { %v1584_v19 = vsel %vm294_vm8, %v1580_v43, %v1582_v53 }
 0x25e   : > { %v1588_v27 = vadd.f32 %v1584_v19, %v1512_v40 }
 0x263   : > { %v1658_v23 = vpop.permute.xlu0 %1657  ;;  %v1734_v25 = vpop.permute.xlu2 %1733 }
 0x264   : > { %v1618_v3 = vpop.permute.xlu1 %1617  ;;  %v1660_v17 = vsel %vm343_vm10, %v1656_v26, %v1658_v23 }
 0x265   : > { %v1622_v54 = vsel %vm294_vm8, %v1618_v3, %v1620_v50  ;;  %v1664_v1 = vadd.f32 %v1660_v17, %v1588_v27 }
 0x266   : > { %v1626_v30 = vadd.f32 %v1622_v54, %v1550_v58 }
 0x26b   : > { %v1694_v20 = vpop.permute.xlu0 %1693  ;;  %v1770_v61 = vpop.permute.xlu2 %1769 }
 0x26c   : > { %v1654_v6 = vpop.permute.xlu1 %1653 }
 0x26d   : > { %v1659_v33 = vsel %vm343_vm10, %v1652_v4, %v1654_v6 }
 0x26e   : > { %v1663_v59 = vadd.f32 %v1659_v33, %v1587_v21 }
 0x273   : > { %v1730_v41 = vpop.permute.xlu0 %1729 }
 0x274   : > { %v1735_v13 = vsel %vm392_vm11, %v1728_v49, %v1730_v41  ;;  %v1690_v52 = vpop.permute.xlu1 %1689 }
 0x275   : > { %v1739_v14 = vadd.f32 %v1735_v13, %v1663_v59  ;;  %v1697_v8 = vsel %vm343_vm10, %v1690_v52, %v1692_v31 }
 0x276   : > { %v1701_v40 = vadd.f32 %v1697_v8, %v1625_v39 }
 0x277   : > { %1779 = vst [vmem:[%s3460_s24] sm:$0xff] %v1739_v14 }
 0x27b   : > { %v1766_v28 = vpop.permute.xlu0 %1765 }
 0x27c   : > { %v1696_v60 = vpop.permute.xlu1 %1695 }
 0x27d   : > { %v1698_v38 = vsel %vm343_vm10, %v1694_v20, %v1696_v60 }
 0x27e   : > { %v1702_v55 = vadd.f32 %v1698_v38, %v1626_v30 }
 0x283   : > { %v1772_v5 = vpop.permute.xlu0 %1771 }
 0x284   : > { %v1774_v57 = vsel %vm392_vm11, %v1770_v61, %v1772_v5  ;;  %v1732_v10 = vpop.permute.xlu1 %1731 }
 0x285   : > { %v1778_v9 = vadd.f32 %v1774_v57, %v1702_v55  ;;  %v1736_v45 = vsel %vm392_vm11, %v1732_v10, %v1734_v25 }
 0x286   : > { %v1740_v47 = vadd.f32 %v1736_v45, %v1664_v1 }
 0x287   : > { %1946 = vst [vmem:[%s3460_s24 + $0x18] sm:$0xff] %v1778_v9 }
 0x288   : > { %1780 = vst [vmem:[%s3460_s24 + $0x8] sm:$0xff] %v1740_v47 }
 0x28c   : > { %v1768_v2 = vpop.permute.xlu1 %1767 }
 0x28d   : > { %v1773_v24 = vsel %vm392_vm11, %v1766_v28, %v1768_v2 }
 0x28e   : > { %v1777_v43 = vadd.f32 %v1773_v24, %v1701_v40 }
 0x290   : > { %1945 = vst [vmem:[%s3460_s24 + $0x10] sm:$0xff] %v1777_v43 }
 0x291   : > { %2105 = shalt.err (!%p2102_p8)
}
 0x292   : > { %s2159_s4 = smov 128   ;;  %s2160_s19 = smov 8  }
 0x293   : > { %1960 = dma.vmem_to_hbm [thread:$0]  (%p2228_p11), %s1798_s6, 512, %s1800_s7, %s1785_s13, %s2159_s4, %s2159_s4, %s2160_s19  }
 0x294 PF: > { %s1814_s25 = sand.u32 1, %s2136_s9   ;;  %p3523_p9 = scmp.ge.s32.totalorder %s2148_s12, 2 }
 0x295   : > { %s1815_s27 = scalar_lea.sflag [#allocation5], %s1814_s25 }
 0x296   : > { %p1971_p10 = pnand %p3523_p9, %p2232_p12 }
 0x298   : > { %p1972_p1 = pneg %p1971_p10 }
 0x29a   : > { %2131 = dma.done.wait (%p1972_p1), %s1815_s27, 512  }
 0x29b   : > { %2133 = vsyncadd (%p1972_p1), %s1815_s27, 4294966784  ;;  %p16_p2 = scmp.ge.s32.totalorder %s2201_s15, 4   ;;  %s3524_s9 = smov %s2140_s10 }
 0x29c   : > { %s3525_s10 = smov %s2144_s11  ;;  %s3526_s11 = smov %s2213_s18 }
 0x29d   : > { %s3527_s12 = smov %s2201_s15  ;;  %18 = sbr.rel (!%p16_p2) target bundleno = 6 (0x6), region = 79 }
 0x2a2   :  { %1821 = vsyncpa [#allocation4], 1 }
 0x2a3   :  { %1823 = vsyncpa [#allocation4 + $0x1], 1 }
 0x2a4   :  { %1824 = vsyncpa [#allocation5], 1 }
 0x2a5   :  { %1826 = vsyncpa [#allocation5 + $0x1], 1 }
 0x2a6   :  { %1827 = vsyncpa [#allocation6], 1 }
 0x2a7   :  { %1829 = vsyncpa [#allocation6 + $0x1], 1 }

</bundles_post_ra>
